<compile_context>
chip_gen: v7x
topology: tpu7x:2x2x1
jax: 0.10.0
libtpu: 0.0.40
codegen_flags: <defaults>
</compile_context>

<pallas_src>
import numpy as np

import jax
import jax.numpy as jnp
from jax.experimental import pallas as pl
from jax.experimental.pallas import tpu as pltpu

BN_EPS = 1e-5
_LAYERS = ((4, 16), (16, 32), (32, 64))   # (Cin, Cout); every conv is k3, s2, p1


# ------------------------------- kernel -------------------------------------

def _conv_bn_relu_layer(act, r_ref, b_ref, s_ref, gb_ref, lmeta):
    """One conv(k3,s2,p1) + BatchNorm(batch stats) + ReLU stage, fully in VMEM.

    act:    [rows_in, wc_in]        f32 activations (rows=(n,h), lanes=(w,c))
    r_ref:  [3*rows_pad, rows_in]   bf16 one-hot H-selectors, dy-stacked along M
    b_ref:  [3*wc_pad, Wo*Cout]     bf16 banded conv weights, dy-stacked along K
    s_ref:  [Wo*Cout, Cout]         f32 block-stacked identity (per-channel lane sum)
    gb_ref: [2, Cout]               f32 (row 0 = gamma, row 1 = beta)
    returns [rows_pad, Wo*Cout]     f32 (rows >= rows_real are zero-derived padding)
    """
    rows_real, rows_pad, wo, cout, wc_pad = lmeta
    rows_in = r_ref.shape[1]

    # Keep only the real rows of the previous layer's output; lane-pad Wi*Cin up
    # to a multiple of 128 so the dy lane-concat below stays tile aligned
    # (padded lanes hit all-zero rows of B_cat, so their contents never matter).
    if act.shape[0] != rows_in:
        act = act[:rows_in, :]
    if act.shape[1] < wc_pad:
        act = jnp.concatenate(
            [act, jnp.zeros((rows_in, wc_pad - act.shape[1]), act.dtype)], axis=1)
    act_b = act.astype(jnp.bfloat16)

    # (1) ONE selector matmul covers all three kernel rows dy (stride-2 + zero
    #     pad in H).  R is 0/1, so bf16 operands are exact.
    rows_all = jnp.dot(r_ref[...], act_b, preferred_element_type=jnp.float32)

    # (2) Lane-concat the three dy blocks (8-aligned sublane slices, 128-aligned
    #     lane blocks), then ONE banded-weight matmul folding all 3x3 taps, the
    #     W-direction stride-2 + zero pad and the channel contraction.
    rows_cat = jnp.concatenate(
        [rows_all[dy * rows_pad:(dy + 1) * rows_pad, :] for dy in range(3)],
        axis=1).astype(jnp.bfloat16)          # exact: one-hot copies of bf16 values
    acc = jnp.dot(rows_cat, b_ref[...], preferred_element_type=jnp.float32)

    # (3) BatchNorm2d (training mode): per-channel stats over the N*Ho*Wo real
    #     positions.  Lanes are (w, c): pool the Wo lane blocks per channel with
    #     one fused f32 stats matmul ([acc ; acc*acc] stacked along sublanes).
    #     Row-padding rows of acc are exactly zero, so they add 0 to the sums.
    count = float(rows_real * wo)                          # = N*Ho*Wo per channel
    stats = jnp.dot(jnp.concatenate([acc, acc * acc], axis=0), s_ref[...],
                    preferred_element_type=jnp.float32)
    mean = jnp.sum(stats[:rows_pad], axis=0, keepdims=True) / count    # [1, Cout]
    ex2 = jnp.sum(stats[rows_pad:], axis=0, keepdims=True) / count     # [1, Cout]
    var = jnp.maximum(ex2 - mean * mean, 0.0)              # one-pass, biased (BN train)
    inv = jax.lax.rsqrt(var + BN_EPS)
    scale = gb_ref[0:1, :] * inv                           # gamma / sqrt(var+eps)
    shift = gb_ref[1:2, :] - mean * scale                  # beta - mean*scale
    scale_f = jnp.tile(scale, (1, wo))                     # back to (w, c) lanes
    shift_f = jnp.tile(shift, (1, wo))
    return jnp.maximum(acc * scale_f + shift_f, 0.0)       # ReLU


def _make_kernel(meta):
    n_layers = len(meta)

    def kernel(x_ref, *refs):
        o_ref = refs[-1]
        act = (x_ref[...] - 0.5) * 2.0       # box_input.add(-0.5).mul(2), in-kernel
        for li in range(n_layers):
            r_ref, b_ref, s_ref, gb_ref = refs[4 * li:4 * li + 4]
            act = _conv_bn_relu_layer(act, r_ref, b_ref, s_ref, gb_ref, meta[li])
        o_ref[...] = act[:meta[-1][0], :]    # drop row padding; lane-dense store

    return kernel


# -------------------------- parameters & folding ----------------------------

def init_params(key):
    """Conv weights (xavier_uniform, relu gain, HWIO layout) + BN gamma/beta.

    The PyTorch conv bias is intentionally omitted: the following BatchNorm
    subtracts the batch mean, which cancels any per-channel constant, so the
    bias never affects the forward output.
    """
    params = []
    gain = float(np.sqrt(2.0))
    for cin, cout in _LAYERS:
        key, kw = jax.random.split(key)
        fan_in, fan_out = cin * 9, cout * 9
        bound = gain * float(np.sqrt(6.0 / (fan_in + fan_out)))
        w = jax.random.uniform(kw, (3, 3, cin, cout), jnp.float32,
                               minval=-bound, maxval=bound)
        gamma = jnp.ones((cout,), jnp.float32)
        beta = jnp.zeros((cout,), jnp.float32)
        params.append((w, gamma, beta))
    return params


def prepare_constants(params, n, h, w):
    """Fold conv weights / BN affines into the kernel's constant operands.

    Per layer (input Hi x Wi, output Ho=Hi/2, Wo=Wi/2):
      R_all [3*rows_pad, N*Hi]  bf16 one-hot H row-gather (stride-2 + zero pad),
                                dy blocks stacked along M, padded to 8-row multiples.
      B_cat [3*wc_pad, Wo*Cout] bf16 banded conv weights (W stride-2 + zero pad),
                                dy blocks stacked along K, padded to 128-row multiples.
      S     [Wo*Cout, Cout]     f32 block-stacked identity (per-channel lane sum).
      gb    [2, Cout]           f32 gamma / beta.
    Built once with numpy outside jit; they become ordinary device constants.
    """
    consts, meta = [], []
    hi, wi = h, w
    for (wgt, gamma, beta) in params:
        wnp = np.asarray(wgt, np.float32)                    # [3, 3, Cin, Cout]
        cin, cout = wnp.shape[2], wnp.shape[3]
        ho, wo = hi // 2, wi // 2
        rows_in, rows_real = n * hi, n * ho
        rows_pad = -(-rows_real // 8) * 8
        wc_pad = -(-(wi * cin) // 128) * 128

        R = np.zeros((3 * rows_pad, rows_in), np.float32)
        for dy in range(3):
            for b in range(n):
                for i in range(ho):
                    y = 2 * i + dy - 1
                    if 0 <= y < hi:
                        R[dy * rows_pad + b * ho + i, b * hi + y] = 1.0

        B = np.zeros((3 * wc_pad, wo * cout), np.float32)
        for dy in range(3):
            for j in range(wo):
                for dx in range(3):
                    x = 2 * j + dx - 1
                    if 0 <= x < wi:
                        B[dy * wc_pad + x * cin:dy * wc_pad + (x + 1) * cin,
                          j * cout:(j + 1) * cout] = wnp[dy, dx]

        S = np.tile(np.eye(cout, dtype=np.float32), (wo, 1))
        gb = np.stack([np.asarray(gamma, np.float32),
                       np.asarray(beta, np.float32)])

        consts += [jnp.asarray(R, jnp.bfloat16),             # 0/1 selectors: exact in bf16
                   jnp.asarray(B, jnp.bfloat16),             # MXU weight operand
                   jnp.asarray(S, jnp.float32),
                   jnp.asarray(gb, jnp.float32)]
        meta.append((rows_real, rows_pad, wo, cout, wc_pad))
        hi, wi = ho, wo
    return tuple(consts), tuple(meta)


# --------------------------------- wrapper ----------------------------------

def make_box_encoder(params, n, h, w):
    cin0 = _LAYERS[0][0]
    consts, meta = prepare_constants(params, n, h, w)
    rows_out, _, wo_last, cout_last, _ = meta[-1]
    vspec = pl.BlockSpec(memory_space=pltpu.MemorySpace.VMEM)

    call = pl.pallas_call(
        _make_kernel(meta),
        out_shape=jax.ShapeDtypeStruct((rows_out, wo_last * cout_last), jnp.float32),
        in_specs=[vspec] * (1 + len(consts)),   # gridless: whole operands in VMEM
        out_specs=vspec,
    )

    @jax.jit
    def forward_nhwc(x_nhwc):
        # [N,H,W,Cin] -> [N*H, W*Cin] is a pure reshape (no transpose / relayout).
        x2d = x_nhwc.astype(jnp.float32).reshape(n * h, w * cin0)
        out = call(x2d, *consts)
        # [N*Ho, Wo*Cout] -> [N,Ho,Wo,Cout] is again a pure (lane-dense) reshape.
        return out.reshape(n, h // 8, w // 8, cout_last)

    @jax.jit
    def forward_nchw(x_nchw):
        # NCHW compatibility shim for parity with the PyTorch module.  These two
        # transposes are layout plumbing; on the hot path stay NHWC end-to-end
        # or fold them into the producer/consumer.
        y = forward_nhwc(jnp.transpose(x_nchw, (0, 2, 3, 1)))
        return jnp.transpose(y, (0, 3, 1, 2))

    return forward_nhwc, forward_nchw


# --------------------------- pure-JAX f32 reference --------------------------

def _conv3x3_s2_p1_nhwc(x, w_hwio):
    nb, hh, ww, _ = x.shape
    ho, wo = hh // 2, ww // 2
    xp = jnp.pad(x, ((0, 0), (1, 1), (1, 1), (0, 0)))
    out = jnp.zeros((nb, ho, wo, w_hwio.shape[-1]), jnp.float32)
    for dy in range(3):
        for dx in range(3):
            patch = xp[:, dy:dy + 2 * ho:2, dx:dx + 2 * wo:2, :]
            out = out + jnp.einsum('nhwc,cd->nhwd', patch, w_hwio[dy, dx])
    return out


def reference_forward_nhwc(x_nhwc, params):
    """Pure-JAX f32 reference of the PyTorch forward (training-mode BN)."""
    y = (x_nhwc.astype(jnp.float32) - 0.5) * 2.0
    for (w_hwio, gamma, beta) in params:
        y = _conv3x3_s2_p1_nhwc(y, w_hwio)       # conv bias cancels inside BN
        mean = jnp.mean(y, axis=(0, 1, 2))
        var = jnp.var(y, axis=(0, 1, 2))         # biased, as BN training mode
        y = (y - mean) * jax.lax.rsqrt(var + BN_EPS) * gamma + beta
        y = jnp.maximum(y, 0.0)
    return y


# ----------------------------------- main ------------------------------------

if __name__ == "__main__":
    key = jax.random.PRNGKey(0)
    key, kx, kp = jax.random.split(key, 3)

    N, H, W, CIN = 2, 16, 16, 4
    # box_input values in [0,1] (forward recenters with (x-0.5)*2).  NHWC layout;
    # the PyTorch NCHW input is just a transpose of this.
    x_nhwc = jax.random.uniform(kx, (N, H, W, CIN), jnp.float32)
    params = init_params(kp)

    forward_nhwc, forward_nchw = make_box_encoder(params, N, H, W)

    out = jax.block_until_ready(forward_nhwc(x_nhwc))
    assert out.shape == (N, H // 8, W // 8, 64), out.shape
    assert out.dtype == jnp.float32

    # Numerical check against a pure-JAX f32 reference.  Conv weights go through
    # the MXU in bf16, so the tolerance is loose; structural bugs would show up
    # as O(1) errors.
    ref = reference_forward_nhwc(x_nhwc, params)
    max_err = float(jnp.max(jnp.abs(out - ref)))
    assert max_err < 0.25, f"max abs error vs f32 reference too large: {max_err}"

    # NCHW compatibility shim (PyTorch layout parity).
    out_nchw = jax.block_until_ready(
        forward_nchw(jnp.transpose(x_nhwc, (0, 3, 1, 2))))
    assert out_nchw.shape == (N, 64, H // 8, W // 8), out_nchw.shape

    print("KERNEL_OK")
</pallas_src>

<mosaic_0001>
module attributes {stable_mosaic.version = 11 : i64} {
  func.func @kernel(%arg0: memref<32x64xf32, #tpu.memory_space<vmem>>, %arg1: memref<48x32xbf16, #tpu.memory_space<vmem>>, %arg2: memref<384x128xbf16, #tpu.memory_space<vmem>>, %arg3: memref<128x16xf32, #tpu.memory_space<vmem>>, %arg4: memref<2x16xf32, #tpu.memory_space<vmem>>, %arg5: memref<24x16xbf16, #tpu.memory_space<vmem>>, %arg6: memref<384x128xbf16, #tpu.memory_space<vmem>>, %arg7: memref<128x32xf32, #tpu.memory_space<vmem>>, %arg8: memref<2x32xf32, #tpu.memory_space<vmem>>, %arg9: memref<24x8xbf16, #tpu.memory_space<vmem>>, %arg10: memref<384x128xbf16, #tpu.memory_space<vmem>>, %arg11: memref<128x64xf32, #tpu.memory_space<vmem>>, %arg12: memref<2x64xf32, #tpu.memory_space<vmem>>, %arg13: memref<4x128xf32, #tpu.memory_space<vmem>>) attributes {dimension_semantics = [], scalar_prefetch = 0 : i64, scratch_operands = 0 : i64, tpu.core_type = #tpu.core_type<tc>} {
    %c0 = arith.constant 0 : index
    %c0_0 = arith.constant 0 : index
    %0 = vector.load %arg0[%c0, %c0_0] : memref<32x64xf32, #tpu.memory_space<vmem>>, vector<32x64xf32>
    %cst = arith.constant 5.000000e-01 : f32
    %1 = vector.broadcast %cst : f32 to vector<32x64xf32>
    %2 = arith.subf %0, %1 : vector<32x64xf32>
    %cst_1 = arith.constant 2.000000e+00 : f32
    %3 = vector.broadcast %cst_1 : f32 to vector<32x64xf32>
    %4 = arith.mulf %2, %3 : vector<32x64xf32>
    %cst_2 = arith.constant 0.000000e+00 : f32
    %5 = vector.broadcast %cst_2 : f32 to vector<32x64xf32>
    %6 = tpu.concatenate %4, %5 in 1 : vector<32x64xf32>, vector<32x64xf32> -> vector<32x128xf32>
    %7 = arith.truncf %6 : vector<32x128xf32> to vector<32x128xbf16>
    %c0_3 = arith.constant 0 : index
    %c0_4 = arith.constant 0 : index
    %8 = vector.load %arg1[%c0_3, %c0_4] : memref<48x32xbf16, #tpu.memory_space<vmem>>, vector<48x32xbf16>
    %cst_5 = arith.constant dense<0.000000e+00> : vector<48x128xf32>
    %9 = tpu.matmul %8, %7, %cst_5 {dimension_numbers = #tpu.dot_dimension_numbers<[1], [0], [0], [1], [0, 0, 1, 1], [], []>} : vector<48x32xbf16>, vector<32x128xbf16>, vector<48x128xf32> -> vector<48x128xf32>
    %10 = vector.extract_strided_slice %9 {offsets = [0, 0], sizes = [16, 128], strides = [1, 1]} : vector<48x128xf32> to vector<16x128xf32>
    %11 = vector.extract_strided_slice %9 {offsets = [16, 0], sizes = [16, 128], strides = [1, 1]} : vector<48x128xf32> to vector<16x128xf32>
    %12 = vector.extract_strided_slice %9 {offsets = [32, 0], sizes = [16, 128], strides = [1, 1]} : vector<48x128xf32> to vector<16x128xf32>
    %13 = tpu.concatenate %10, %11, %12 in 1 : vector<16x128xf32>, vector<16x128xf32>, vector<16x128xf32> -> vector<16x384xf32>
    %14 = arith.truncf %13 : vector<16x384xf32> to vector<16x384xbf16>
    %c0_6 = arith.constant 0 : index
    %c0_7 = arith.constant 0 : index
    %15 = vector.load %arg2[%c0_6, %c0_7] : memref<384x128xbf16, #tpu.memory_space<vmem>>, vector<384x128xbf16>
    %cst_8 = arith.constant dense<0.000000e+00> : vector<16x128xf32>
    %16 = tpu.matmul %14, %15, %cst_8 {dimension_numbers = #tpu.dot_dimension_numbers<[1], [0], [0], [1], [0, 0, 1, 1], [], []>} : vector<16x384xbf16>, vector<384x128xbf16>, vector<16x128xf32> -> vector<16x128xf32>
    %17 = arith.mulf %16, %16 : vector<16x128xf32>
    %18 = tpu.concatenate %16, %17 in 0 : vector<16x128xf32>, vector<16x128xf32> -> vector<32x128xf32>
    %c0_9 = arith.constant 0 : index
    %c0_10 = arith.constant 0 : index
    %19 = vector.load %arg3[%c0_9, %c0_10] : memref<128x16xf32, #tpu.memory_space<vmem>>, vector<128x16xf32>
    %cst_11 = arith.constant dense<0.000000e+00> : vector<32x16xf32>
    %20 = tpu.matmul %18, %19, %cst_11 {dimension_numbers = #tpu.dot_dimension_numbers<[1], [0], [0], [1], [0, 0, 1, 1], [], []>} : vector<32x128xf32>, vector<128x16xf32>, vector<32x16xf32> -> vector<32x16xf32>
    %21 = vector.extract_strided_slice %20 {offsets = [0, 0], sizes = [16, 16], strides = [1, 1]} : vector<32x16xf32> to vector<16x16xf32>
    %cst_12 = arith.constant dense<0.000000e+00> : vector<16xf32>
    %22 = vector.multi_reduction <add>, %21, %cst_12 [0] : vector<16x16xf32> to vector<16xf32>
    %23 = vector.shape_cast %22 : vector<16xf32> to vector<1x16xf32>
    %cst_13 = arith.constant 1.280000e+02 : f32
    %24 = vector.broadcast %cst_13 : f32 to vector<1x16xf32>
    %25 = arith.divf %23, %24 : vector<1x16xf32>
    %26 = vector.extract_strided_slice %20 {offsets = [16, 0], sizes = [16, 16], strides = [1, 1]} : vector<32x16xf32> to vector<16x16xf32>
    %cst_14 = arith.constant dense<0.000000e+00> : vector<16xf32>
    %27 = vector.multi_reduction <add>, %26, %cst_14 [0] : vector<16x16xf32> to vector<16xf32>
    %28 = vector.shape_cast %27 : vector<16xf32> to vector<1x16xf32>
    %cst_15 = arith.constant 1.280000e+02 : f32
    %29 = vector.broadcast %cst_15 : f32 to vector<1x16xf32>
    %30 = arith.divf %28, %29 : vector<1x16xf32>
    %31 = arith.mulf %25, %25 : vector<1x16xf32>
    %32 = arith.subf %30, %31 : vector<1x16xf32>
    %cst_16 = arith.constant 0.000000e+00 : f32
    %33 = vector.broadcast %cst_16 : f32 to vector<1x16xf32>
    %34 = arith.maximumf %32, %33 : vector<1x16xf32>
    %cst_17 = arith.constant 9.99999974E-6 : f32
    %35 = vector.broadcast %cst_17 : f32 to vector<1x16xf32>
    %36 = arith.addf %34, %35 : vector<1x16xf32>
    %37 = math.rsqrt %36 : vector<1x16xf32>
    %c0_18 = arith.constant 0 : index
    %c0_19 = arith.constant 0 : index
    %38 = vector.load %arg4[%c0_18, %c0_19] : memref<2x16xf32, #tpu.memory_space<vmem>>, vector<1x16xf32>
    %39 = arith.mulf %38, %37 : vector<1x16xf32>
    %c1 = arith.constant 1 : index
    %c0_20 = arith.constant 0 : index
    %40 = vector.load %arg4[%c1, %c0_20] : memref<2x16xf32, #tpu.memory_space<vmem>>, vector<1x16xf32>
    %41 = arith.mulf %25, %39 : vector<1x16xf32>
    %42 = arith.subf %40, %41 : vector<1x16xf32>
    %43 = tpu.concatenate %39, %39, %39, %39, %39, %39, %39, %39 in 1 : vector<1x16xf32>, vector<1x16xf32>, vector<1x16xf32>, vector<1x16xf32>, vector<1x16xf32>, vector<1x16xf32>, vector<1x16xf32>, vector<1x16xf32> -> vector<1x128xf32>
    %44 = tpu.concatenate %42, %42, %42, %42, %42, %42, %42, %42 in 1 : vector<1x16xf32>, vector<1x16xf32>, vector<1x16xf32>, vector<1x16xf32>, vector<1x16xf32>, vector<1x16xf32>, vector<1x16xf32>, vector<1x16xf32> -> vector<1x128xf32>
    %45 = vector.broadcast %43 : vector<1x128xf32> to vector<16x128xf32>
    %46 = arith.mulf %16, %45 : vector<16x128xf32>
    %47 = vector.broadcast %44 : vector<1x128xf32> to vector<16x128xf32>
    %48 = arith.addf %46, %47 : vector<16x128xf32>
    %cst_21 = arith.constant 0.000000e+00 : f32
    %49 = vector.broadcast %cst_21 : f32 to vector<16x128xf32>
    %50 = arith.maximumf %48, %49 : vector<16x128xf32>
    %51 = arith.truncf %50 : vector<16x128xf32> to vector<16x128xbf16>
    %c0_22 = arith.constant 0 : index
    %c0_23 = arith.constant 0 : index
    %52 = vector.load %arg5[%c0_22, %c0_23] : memref<24x16xbf16, #tpu.memory_space<vmem>>, vector<24x16xbf16>
    %cst_24 = arith.constant dense<0.000000e+00> : vector<24x128xf32>
    %53 = tpu.matmul %52, %51, %cst_24 {dimension_numbers = #tpu.dot_dimension_numbers<[1], [0], [0], [1], [0, 0, 1, 1], [], []>} : vector<24x16xbf16>, vector<16x128xbf16>, vector<24x128xf32> -> vector<24x128xf32>
    %54 = vector.extract_strided_slice %53 {offsets = [0, 0], sizes = [8, 128], strides = [1, 1]} : vector<24x128xf32> to vector<8x128xf32>
    %55 = vector.extract_strided_slice %53 {offsets = [8, 0], sizes = [8, 128], strides = [1, 1]} : vector<24x128xf32> to vector<8x128xf32>
    %56 = vector.extract_strided_slice %53 {offsets = [16, 0], sizes = [8, 128], strides = [1, 1]} : vector<24x128xf32> to vector<8x128xf32>
    %57 = tpu.concatenate %54, %55, %56 in 1 : vector<8x128xf32>, vector<8x128xf32>, vector<8x128xf32> -> vector<8x384xf32>
    %58 = arith.truncf %57 : vector<8x384xf32> to vector<8x384xbf16>
    %c0_25 = arith.constant 0 : index
    %c0_26 = arith.constant 0 : index
    %59 = vector.load %arg6[%c0_25, %c0_26] : memref<384x128xbf16, #tpu.memory_space<vmem>>, vector<384x128xbf16>
    %cst_27 = arith.constant dense<0.000000e+00> : vector<8x128xf32>
    %60 = tpu.matmul %58, %59, %cst_27 {dimension_numbers = #tpu.dot_dimension_numbers<[1], [0], [0], [1], [0, 0, 1, 1], [], []>} : vector<8x384xbf16>, vector<384x128xbf16>, vector<8x128xf32> -> vector<8x128xf32>
    %61 = arith.mulf %60, %60 : vector<8x128xf32>
    %62 = tpu.concatenate %60, %61 in 0 : vector<8x128xf32>, vector<8x128xf32> -> vector<16x128xf32>
    %c0_28 = arith.constant 0 : index
    %c0_29 = arith.constant 0 : index
    %63 = vector.load %arg7[%c0_28, %c0_29] : memref<128x32xf32, #tpu.memory_space<vmem>>, vector<128x32xf32>
    %cst_30 = arith.constant dense<0.000000e+00> : vector<16x32xf32>
    %64 = tpu.matmul %62, %63, %cst_30 {dimension_numbers = #tpu.dot_dimension_numbers<[1], [0], [0], [1], [0, 0, 1, 1], [], []>} : vector<16x128xf32>, vector<128x32xf32>, vector<16x32xf32> -> vector<16x32xf32>
    %65 = vector.extract_strided_slice %64 {offsets = [0, 0], sizes = [8, 32], strides = [1, 1]} : vector<16x32xf32> to vector<8x32xf32>
    %cst_31 = arith.constant dense<0.000000e+00> : vector<32xf32>
    %66 = vector.multi_reduction <add>, %65, %cst_31 [0] : vector<8x32xf32> to vector<32xf32>
    %67 = vector.shape_cast %66 : vector<32xf32> to vector<1x32xf32>
    %cst_32 = arith.constant 3.200000e+01 : f32
    %68 = vector.broadcast %cst_32 : f32 to vector<1x32xf32>
    %69 = arith.divf %67, %68 : vector<1x32xf32>
    %70 = vector.extract_strided_slice %64 {offsets = [8, 0], sizes = [8, 32], strides = [1, 1]} : vector<16x32xf32> to vector<8x32xf32>
    %cst_33 = arith.constant dense<0.000000e+00> : vector<32xf32>
    %71 = vector.multi_reduction <add>, %70, %cst_33 [0] : vector<8x32xf32> to vector<32xf32>
    %72 = vector.shape_cast %71 : vector<32xf32> to vector<1x32xf32>
    %cst_34 = arith.constant 3.200000e+01 : f32
    %73 = vector.broadcast %cst_34 : f32 to vector<1x32xf32>
    %74 = arith.divf %72, %73 : vector<1x32xf32>
    %75 = arith.mulf %69, %69 : vector<1x32xf32>
    %76 = arith.subf %74, %75 : vector<1x32xf32>
    %cst_35 = arith.constant 0.000000e+00 : f32
    %77 = vector.broadcast %cst_35 : f32 to vector<1x32xf32>
    %78 = arith.maximumf %76, %77 : vector<1x32xf32>
    %cst_36 = arith.constant 9.99999974E-6 : f32
    %79 = vector.broadcast %cst_36 : f32 to vector<1x32xf32>
    %80 = arith.addf %78, %79 : vector<1x32xf32>
    %81 = math.rsqrt %80 : vector<1x32xf32>
    %c0_37 = arith.constant 0 : index
    %c0_38 = arith.constant 0 : index
    %82 = vector.load %arg8[%c0_37, %c0_38] : memref<2x32xf32, #tpu.memory_space<vmem>>, vector<1x32xf32>
    %83 = arith.mulf %82, %81 : vector<1x32xf32>
    %c1_39 = arith.constant 1 : index
    %c0_40 = arith.constant 0 : index
    %84 = vector.load %arg8[%c1_39, %c0_40] : memref<2x32xf32, #tpu.memory_space<vmem>>, vector<1x32xf32>
    %85 = arith.mulf %69, %83 : vector<1x32xf32>
    %86 = arith.subf %84, %85 : vector<1x32xf32>
    %87 = tpu.concatenate %83, %83, %83, %83 in 1 : vector<1x32xf32>, vector<1x32xf32>, vector<1x32xf32>, vector<1x32xf32> -> vector<1x128xf32>
    %88 = tpu.concatenate %86, %86, %86, %86 in 1 : vector<1x32xf32>, vector<1x32xf32>, vector<1x32xf32>, vector<1x32xf32> -> vector<1x128xf32>
    %89 = vector.broadcast %87 : vector<1x128xf32> to vector<8x128xf32>
    %90 = arith.mulf %60, %89 : vector<8x128xf32>
    %91 = vector.broadcast %88 : vector<1x128xf32> to vector<8x128xf32>
    %92 = arith.addf %90, %91 : vector<8x128xf32>
    %cst_41 = arith.constant 0.000000e+00 : f32
    %93 = vector.broadcast %cst_41 : f32 to vector<8x128xf32>
    %94 = arith.maximumf %92, %93 : vector<8x128xf32>
    %95 = arith.truncf %94 : vector<8x128xf32> to vector<8x128xbf16>
    %c0_42 = arith.constant 0 : index
    %c0_43 = arith.constant 0 : index
    %96 = vector.load %arg9[%c0_42, %c0_43] : memref<24x8xbf16, #tpu.memory_space<vmem>>, vector<24x8xbf16>
    %cst_44 = arith.constant dense<0.000000e+00> : vector<24x128xf32>
    %97 = tpu.matmul %96, %95, %cst_44 {dimension_numbers = #tpu.dot_dimension_numbers<[1], [0], [0], [1], [0, 0, 1, 1], [], []>} : vector<24x8xbf16>, vector<8x128xbf16>, vector<24x128xf32> -> vector<24x128xf32>
    %98 = vector.extract_strided_slice %97 {offsets = [0, 0], sizes = [8, 128], strides = [1, 1]} : vector<24x128xf32> to vector<8x128xf32>
    %99 = vector.extract_strided_slice %97 {offsets = [8, 0], sizes = [8, 128], strides = [1, 1]} : vector<24x128xf32> to vector<8x128xf32>
    %100 = vector.extract_strided_slice %97 {offsets = [16, 0], sizes = [8, 128], strides = [1, 1]} : vector<24x128xf32> to vector<8x128xf32>
    %101 = tpu.concatenate %98, %99, %100 in 1 : vector<8x128xf32>, vector<8x128xf32>, vector<8x128xf32> -> vector<8x384xf32>
    %102 = arith.truncf %101 : vector<8x384xf32> to vector<8x384xbf16>
    %c0_45 = arith.constant 0 : index
    %c0_46 = arith.constant 0 : index
    %103 = vector.load %arg10[%c0_45, %c0_46] : memref<384x128xbf16, #tpu.memory_space<vmem>>, vector<384x128xbf16>
    %cst_47 = arith.constant dense<0.000000e+00> : vector<8x128xf32>
    %104 = tpu.matmul %102, %103, %cst_47 {dimension_numbers = #tpu.dot_dimension_numbers<[1], [0], [0], [1], [0, 0, 1, 1], [], []>} : vector<8x384xbf16>, vector<384x128xbf16>, vector<8x128xf32> -> vector<8x128xf32>
    %105 = arith.mulf %104, %104 : vector<8x128xf32>
    %106 = tpu.concatenate %104, %105 in 0 : vector<8x128xf32>, vector<8x128xf32> -> vector<16x128xf32>
    %c0_48 = arith.constant 0 : index
    %c0_49 = arith.constant 0 : index
    %107 = vector.load %arg11[%c0_48, %c0_49] : memref<128x64xf32, #tpu.memory_space<vmem>>, vector<128x64xf32>
    %cst_50 = arith.constant dense<0.000000e+00> : vector<16x64xf32>
    %108 = tpu.matmul %106, %107, %cst_50 {dimension_numbers = #tpu.dot_dimension_numbers<[1], [0], [0], [1], [0, 0, 1, 1], [], []>} : vector<16x128xf32>, vector<128x64xf32>, vector<16x64xf32> -> vector<16x64xf32>
    %109 = vector.extract_strided_slice %108 {offsets = [0, 0], sizes = [8, 64], strides = [1, 1]} : vector<16x64xf32> to vector<8x64xf32>
    %cst_51 = arith.constant dense<0.000000e+00> : vector<64xf32>
    %110 = vector.multi_reduction <add>, %109, %cst_51 [0] : vector<8x64xf32> to vector<64xf32>
    %111 = vector.shape_cast %110 : vector<64xf32> to vector<1x64xf32>
    %cst_52 = arith.constant 8.000000e+00 : f32
    %112 = vector.broadcast %cst_52 : f32 to vector<1x64xf32>
    %113 = arith.divf %111, %112 : vector<1x64xf32>
    %114 = vector.extract_strided_slice %108 {offsets = [8, 0], sizes = [8, 64], strides = [1, 1]} : vector<16x64xf32> to vector<8x64xf32>
    %cst_53 = arith.constant dense<0.000000e+00> : vector<64xf32>
    %115 = vector.multi_reduction <add>, %114, %cst_53 [0] : vector<8x64xf32> to vector<64xf32>
    %116 = vector.shape_cast %115 : vector<64xf32> to vector<1x64xf32>
    %cst_54 = arith.constant 8.000000e+00 : f32
    %117 = vector.broadcast %cst_54 : f32 to vector<1x64xf32>
    %118 = arith.divf %116, %117 : vector<1x64xf32>
    %119 = arith.mulf %113, %113 : vector<1x64xf32>
    %120 = arith.subf %118, %119 : vector<1x64xf32>
    %cst_55 = arith.constant 0.000000e+00 : f32
    %121 = vector.broadcast %cst_55 : f32 to vector<1x64xf32>
    %122 = arith.maximumf %120, %121 : vector<1x64xf32>
    %cst_56 = arith.constant 9.99999974E-6 : f32
    %123 = vector.broadcast %cst_56 : f32 to vector<1x64xf32>
    %124 = arith.addf %122, %123 : vector<1x64xf32>
    %125 = math.rsqrt %124 : vector<1x64xf32>
    %c0_57 = arith.constant 0 : index
    %c0_58 = arith.constant 0 : index
    %126 = vector.load %arg12[%c0_57, %c0_58] : memref<2x64xf32, #tpu.memory_space<vmem>>, vector<1x64xf32>
    %127 = arith.mulf %126, %125 : vector<1x64xf32>
    %c1_59 = arith.constant 1 : index
    %c0_60 = arith.constant 0 : index
    %128 = vector.load %arg12[%c1_59, %c0_60] : memref<2x64xf32, #tpu.memory_space<vmem>>, vector<1x64xf32>
    %129 = arith.mulf %113, %127 : vector<1x64xf32>
    %130 = arith.subf %128, %129 : vector<1x64xf32>
    %131 = tpu.concatenate %127, %127 in 1 : vector<1x64xf32>, vector<1x64xf32> -> vector<1x128xf32>
    %132 = tpu.concatenate %130, %130 in 1 : vector<1x64xf32>, vector<1x64xf32> -> vector<1x128xf32>
    %133 = vector.broadcast %131 : vector<1x128xf32> to vector<8x128xf32>
    %134 = arith.mulf %104, %133 : vector<8x128xf32>
    %135 = vector.broadcast %132 : vector<1x128xf32> to vector<8x128xf32>
    %136 = arith.addf %134, %135 : vector<8x128xf32>
    %cst_61 = arith.constant 0.000000e+00 : f32
    %137 = vector.broadcast %cst_61 : f32 to vector<8x128xf32>
    %138 = arith.maximumf %136, %137 : vector<8x128xf32>
    %139 = vector.extract_strided_slice %138 {offsets = [0, 0], sizes = [4, 128], strides = [1, 1]} : vector<8x128xf32> to vector<4x128xf32>
    %c0_62 = arith.constant 0 : index
    %c0_63 = arith.constant 0 : index
    %140 = vector.load %arg13[%c0_62, %c0_63] : memref<4x128xf32, #tpu.memory_space<vmem>>, vector<4x128xf32>
    tpu.vector_store %arg13[%c0_62, %c0_63], %139 {strides = array<i32>} : memref<4x128xf32, #tpu.memory_space<vmem>>, vector<4x128xf32>,
    return
  }
}

</mosaic_0001>

<bundles_post_ra>
// kernel: forward_nhwc.1
= control target key start
LH: loop header
LB: loop body
LE: loop exit
PB: predicated region body
PF: predicated region fallthrough
CT: control target
= control target key end

     0   :  { %18 = vsyncpa [#allocation3], 0  ;;  %s3101_s0 = inlined_call_operand.vmem [shape: f32[32,64], index: 0, kind: input, shape index: {}]   ;;  %s3102_s1 = inlined_call_operand.hbm [shape: bf16[48,32], index: 1, kind: input, shape index: {}]   ;;  %s3103_s2 = inlined_call_operand.vmem [shape: bf16[384,128], index: 2, kind: input, shape index: {}]   ;;  %s3104_s3 = inlined_call_operand.hbm [shape: f32[128,16], index: 3, kind: input, shape index: {}]   ;;  %s3105_s4 = inlined_call_operand.hbm [shape: f32[2,16], index: 4, kind: input, shape index: {}]   ;;  %s3106_s5 = inlined_call_operand.hbm [shape: bf16[24,16], index: 5, kind: input, shape index: {}]   ;;  %s3107_s6 = inlined_call_operand.vmem [shape: bf16[384,128], index: 6, kind: input, shape index: {}]   ;;  %s3108_s7 = inlined_call_operand.hbm [shape: f32[128,32], index: 7, kind: input, shape index: {}]   ;;  %s3109_s8 = inlined_call_operand.vmem [shape: f32[2,32], index: 8, kind: input, shape index: {}]   ;;  %s3110_s9 = inlined_call_operand.hbm [shape: bf16[24,8], index: 9, kind: input, shape index: {}]   ;;  %s3111_s10 = inlined_call_operand.vmem [shape: bf16[384,128], index: 10, kind: input, shape index: {}]   ;;  %s3112_s11 = inlined_call_operand.hbm [shape: f32[128,64], index: 11, kind: input, shape index: {}]   ;;  %s3113_s12 = inlined_call_operand.vmem [shape: f32[2,64], index: 12, kind: input, shape index: {}]   ;;  %s3114_s13 = inlined_call_operand.vmem [shape: f32[4,128], index: 13, kind: output, shape index: {}]  }
   0x1   :  { %19 = vsyncpa [#allocation5], 0 }
   0x2   :  { %20 = vsyncpa [#allocation8], 0 }
   0x3   :  { %21 = vsyncpa [#allocation11], 0  ;;  %s2540_s25 = smov [#allocation4]   ;;  %s2378_s29 = scalar_lea.hbm %s3104_s3, 2048 }
   0x4   :  { %s43_s26 = sshll.u32 %s2540_s25, 4  ;;  %p2379_p0 = scmp.ne.s32.totalorder %s3104_s3, %s2378_s29  ;;  %s44_s26 = int_to_ptr.vmem [resolvable:$true] %s43_s26 }
   0x5   :  { %p2382_p1 = scmp.lt.u32.totalorder %s2378_s29, %s3104_s3 }
   0x7   :  { %p2384_p2 = pnand %p2382_p1, %p2379_p0 }
   0x9   :  { %2387 = shalt.err (!%p2384_p2)
}
   0xa   :  { %s2388_s17 = scalar_lea.vmem %s44_s26, 2048  ;;  %p2393_p4 = scmp.lt.s32.totalorder %s44_s26, %s44_s26 }
   0xb   :  { %p2389_p3 = scmp.ne.s32.totalorder %s44_s26, %s2388_s17  ;;  %p2394_p5 = scmp.lt.s32.totalorder %s2388_s17, %s2388_s17 }
   0xd   :  { %p2395_p6 = por %p2394_p5, %p2393_p4 }
   0xf   :  { %p2396_p7 = pnand %p2395_p6, %p2389_p3 }
  0x11   :  { %2399 = shalt.err (!%p2396_p7)
}
  0x12   :  { %s2541_s18 = smov 128   ;;  %s2542_s19 = smov 8  }
  0x13   :  { %49 = dma.hbm_to_vmem [thread:$0]  %s3104_s3, 2048, %s44_s26, [#allocation5], %s2541_s18, %s2541_s18, %s2542_s19  }
  0x14   :  { %s2543_s22 = smov [#allocation7]   ;;  %s2544_s24 = smov [#allocation10]  }
  0x15   :  { %s65_s23 = sshll.u32 %s2543_s22, 4  ;;  %s93_s25 = sshll.u32 %s2544_s24, 4  ;;  %s66_s23 = int_to_ptr.vmem [resolvable:$true] %s65_s23  ;;  %s94_s25 = int_to_ptr.vmem [resolvable:$true] %s93_s25 }
  0x16   :  { %s2400_s29 = scalar_lea.hbm %s3106_s5, 192 }
  0x17   :  { %p2401_p8 = scmp.ne.s32.totalorder %s3106_s5, %s2400_s29  ;;  %p2404_p9 = scmp.lt.u32.totalorder %s2400_s29, %s3106_s5 }
  0x19   :  { %p2406_p10 = pnand %p2404_p9, %p2401_p8 }
  0x1b   :  { %2409 = shalt.err (!%p2406_p10)
}
  0x1c   :  { %s2410_s3 = scalar_lea.vmem %s66_s23, 192  ;;  %p2415_p12 = scmp.lt.s32.totalorder %s66_s23, %s66_s23 }
  0x1d   :  { %p2411_p11 = scmp.ne.s32.totalorder %s66_s23, %s2410_s3  ;;  %p2416_p13 = scmp.lt.s32.totalorder %s2410_s3, %s2410_s3 }
  0x1f   :  { %p2417_p0 = por %p2416_p13, %p2415_p12 }
  0x21   :  { %p2418_p1 = pnand %p2417_p0, %p2411_p11 }
  0x23   :  { %2421 = shalt.err (!%p2418_p1)
}
  0x24   :  { %s2545_s26 = smov 64   ;;  %s2546_s17 = smov 4  }
  0x25   :  { %71 = dma.hbm_to_vmem [thread:$0]  %s3106_s5, 192, %s66_s23, [#allocation8], %s2545_s26, %s2545_s26, %s2546_s17  }
  0x26   :  { %s2422_s27 = scalar_lea.hbm %s3110_s9, 192 }
  0x27   :  { %p2423_p2 = scmp.ne.s32.totalorder %s3110_s9, %s2422_s27  ;;  %p2426_p3 = scmp.lt.u32.totalorder %s2422_s27, %s3110_s9 }
  0x29   :  { %p2428_p4 = pnand %p2426_p3, %p2423_p2 }
  0x2b   :  { %2431 = shalt.err (!%p2428_p4)
}
  0x2c   :  { %s2432_s15 = scalar_lea.vmem %s94_s25, 192  ;;  %p2437_p6 = scmp.lt.s32.totalorder %s94_s25, %s94_s25 }
  0x2d   :  { %p2433_p5 = scmp.ne.s32.totalorder %s94_s25, %s2432_s15  ;;  %p2438_p7 = scmp.lt.s32.totalorder %s2432_s15, %s2432_s15 }
  0x2f   :  { %p2439_p8 = por %p2438_p7, %p2437_p6 }
  0x31   :  { %p2440_p9 = pnand %p2439_p8, %p2433_p5 }
  0x33   :  { %2443 = shalt.err (!%p2440_p9)
}
  0x34   :  { %99 = dma.hbm_to_vmem [thread:$0]  %s3110_s9, 192, %s94_s25, [#allocation11], %s2545_s26, %s2545_s26, %s2546_s17  }
  0x35   :  { %s2547_s16 = smov [#allocation2]   ;;  %s2548_s20 = smov [#allocation6]  }
  0x36   :  { %s29_s3 = sshll.u32 %s2547_s16, 4  ;;  %s56_s21 = sshll.u32 %s2548_s20, 4  ;;  %s30_s3 = int_to_ptr.vmem [resolvable:$true] %s29_s3  ;;  %s57_s21 = int_to_ptr.vmem [resolvable:$true] %s56_s21 }
  0x37   :  { %s2444_s27 = scalar_lea.hbm %s3102_s1, 384 }
  0x38   :  { %p2445_p10 = scmp.ne.s32.totalorder %s3102_s1, %s2444_s27  ;;  %p2448_p11 = scmp.lt.u32.totalorder %s2444_s27, %s3102_s1 }
  0x3a   :  { %p2450_p12 = pnand %p2448_p11, %p2445_p10 }
  0x3c   :  { %2453 = shalt.err (!%p2450_p12)
}
  0x3d   :  { %s2454_s9 = scalar_lea.vmem %s30_s3, 384  ;;  %p2459_p0 = scmp.lt.s32.totalorder %s30_s3, %s30_s3 }
  0x3e   :  { %p2455_p13 = scmp.ne.s32.totalorder %s30_s3, %s2454_s9  ;;  %p2460_p1 = scmp.lt.s32.totalorder %s2454_s9, %s2454_s9 }
  0x40   :  { %p2461_p2 = por %p2460_p1, %p2459_p0 }
  0x42   :  { %p2462_p3 = pnand %p2461_p2, %p2455_p13 }
  0x44   :  { %2465 = shalt.err (!%p2462_p3)
}
  0x45   :  { %35 = dma.hbm_to_vmem [thread:$0]  %s3102_s1, 384, %s30_s3, [#allocation3], %s2545_s26, %s2545_s26, %s2546_s17  }
  0x46   :  { %s2466_s16 = scalar_lea.hbm %s3105_s4, 32 }
  0x47   :  { %p2467_p4 = scmp.ne.s32.totalorder %s3105_s4, %s2466_s16  ;;  %p2470_p5 = scmp.lt.u32.totalorder %s2466_s16, %s3105_s4 }
  0x49   :  { %p2472_p6 = pnand %p2470_p5, %p2467_p4 }
  0x4b   :  { %2475 = shalt.err (!%p2472_p6)
}
  0x4c   :  { %s2476_s28 = scalar_lea.vmem %s57_s21, 32  ;;  %p2481_p8 = scmp.lt.s32.totalorder %s57_s21, %s57_s21 }
  0x4d   :  { %p2477_p7 = scmp.ne.s32.totalorder %s57_s21, %s2476_s28  ;;  %p2482_p9 = scmp.lt.s32.totalorder %s2476_s28, %s2476_s28 }
  0x4f   :  { %p2483_p10 = por %p2482_p9, %p2481_p8 }
  0x51   :  { %p2484_p11 = pnand %p2483_p10, %p2477_p7 }
  0x53   :  { %2487 = shalt.err (!%p2484_p11)
}
  0x54   :  { %59 = dma.hbm_to_vmem [thread:$0]  %s3105_s4, 32, %s57_s21, [#allocation5]  }
  0x55   :  { %s2549_s3 = smov [#allocation9]   ;;  %s2550_s30 = smov [#allocation12]  }
  0x56   :  { %s79_s29 = sshll.u32 %s2549_s3, 4  ;;  %s107_s14 = sshll.u32 %s2550_s30, 4  ;;  %s80_s29 = int_to_ptr.vmem [resolvable:$true] %s79_s29  ;;  %s108_s14 = int_to_ptr.vmem [resolvable:$true] %s107_s14 }
  0x57   :  { %s2488_s15 = scalar_lea.hbm %s3108_s7, 2048 }
  0x58   :  { %p2489_p12 = scmp.ne.s32.totalorder %s3108_s7, %s2488_s15  ;;  %p2492_p13 = scmp.lt.u32.totalorder %s2488_s15, %s3108_s7 }
  0x5a   :  { %p2494_p0 = pnand %p2492_p13, %p2489_p12 }
  0x5c   :  { %2497 = shalt.err (!%p2494_p0)
}
  0x5d   :  { %s2498_s4 = scalar_lea.vmem %s80_s29, 2048  ;;  %p2503_p2 = scmp.lt.s32.totalorder %s80_s29, %s80_s29 }
  0x5e   :  { %p2499_p1 = scmp.ne.s32.totalorder %s80_s29, %s2498_s4  ;;  %p2504_p3 = scmp.lt.s32.totalorder %s2498_s4, %s2498_s4 }
  0x60   :  { %p2505_p4 = por %p2504_p3, %p2503_p2 }
  0x62   :  { %p2506_p5 = pnand %p2505_p4, %p2499_p1 }
  0x64   :  { %2509 = shalt.err (!%p2506_p5)
}
  0x65   :  { %85 = dma.hbm_to_vmem [thread:$0]  %s3108_s7, 2048, %s80_s29, [#allocation8], %s2541_s18, %s2541_s18, %s2542_s19  }
  0x66   :  { %s2510_s28 = scalar_lea.hbm %s3112_s11, 2048 }
  0x67   :  { %p2511_p6 = scmp.ne.s32.totalorder %s3112_s11, %s2510_s28  ;;  %p2514_p7 = scmp.lt.u32.totalorder %s2510_s28, %s3112_s11 }
  0x69   :  { %p2516_p8 = pnand %p2514_p7, %p2511_p6 }
  0x6b   :  { %2519 = shalt.err (!%p2516_p8)
}
  0x6c   :  { %s2520_s9 = scalar_lea.vmem %s108_s14, 2048  ;;  %p2525_p10 = scmp.lt.s32.totalorder %s108_s14, %s108_s14 }
  0x6d   :  { %p2521_p9 = scmp.ne.s32.totalorder %s108_s14, %s2520_s9  ;;  %p2526_p11 = scmp.lt.s32.totalorder %s2520_s9, %s2520_s9 }
  0x6f   :  { %p2527_p12 = por %p2526_p11, %p2525_p10 }
  0x71   :  { %p2528_p13 = pnand %p2527_p12, %p2521_p9 }
  0x73   :  { %2531 = shalt.err (!%p2528_p13)
}
  0x74   :  { %113 = dma.hbm_to_vmem [thread:$0]  %s3112_s11, 2048, %s108_s14, [#allocation11], %s2541_s18, %s2541_s18, %s2542_s19  }
  0x75   :  { %2532 = dma.done.wait [#allocation3], 384  }
  0x76   :  { %2533 = vsyncadd [#allocation3], 4294966912 }
  0x77   :  { %2534 = dma.done.wait [#allocation5], 2080  }
  0x78   :  { %2535 = vsyncadd [#allocation5], 4294965216 }
  0x79   :  { %2536 = dma.done.wait [#allocation8], 2240  }
  0x7a   :  { %2537 = vsyncadd [#allocation8], 4294965056 }
  0x7b   :  { %2538 = dma.done.wait [#allocation11], 2240  }
  0x7c   :  { %2539 = vsyncadd [#allocation11], 4294965056  ;;  %v2551_v0 = vmov 0.0   ;;  %vm2552_vm0 = vmmov 0   ;;  %v138_v1 = vld [vmem:[%s3101_s0] sm:$0xff]  ;;  %v139_v2 = vld [vmem:[%s3101_s0 + $0x8] sm:$0xff] }
  0x7d   :  { %1981 = vmatprep.subr.bf16.mxu0 %v2551_v0  ;;  %1985 = vmatprep.mubr.msk.bf16.mxu0 %vm2552_vm0, %v2551_v0  ;;  %vm150_vm1 = vcmask 523264   ;;  %v140_v3 = vld [vmem:[%s3101_s0 + $0x10] sm:$0xff]  ;;  %v1725_v4 = vadd.f32 -0.5, %v138_v1  ;;  %v1726_v5 = vadd.f32 -0.5, %v139_v2  ;;  %v141_v6 = vld [vmem:[%s3101_s0 + $0x18] sm:$0xff]  ;;  %v2296_v14 = vld [vmem:[%s3103_s2 + $0x40] sm:$0xff]  }
  0x7e   :  { %v1727_v7 = vadd.f32 -0.5, %v140_v3  ;;  %v1728_v8 = vadd.f32 -0.5, %v141_v6  ;;  %vm1732_vm2 = vmpackc.low %vm150_vm1, %vm150_vm1  ;;  %v2297_v15 = vld [vmem:[%s3103_s2] sm:$0xff]   ;;  %1826 = vmatprep.subr.bf16.mxu1 %v2296_v14  ;;  %v2298_v17 = vld [vmem:[%s3103_s2 + $0x48] sm:$0xff]   ;;  %vm178_vm3 = vcmask 261120   ;;  %vm625_vm4 = vcmask 130048  }
  0x7f   :  { %v146_v9 = vmul.f32 2.0, %v1725_v4  ;;  %v147_v10 = vmul.f32 2.0, %v1726_v5  ;;  %1827 = vmatpush3.bf16.msra.mxu1 %v2297_v15  ;;  %v2299_v18 = vld [vmem:[%s3103_s2 + $0x8] sm:$0xff]   ;;  %v2300_v19 = vld [vmem:[%s3103_s2 + $0x50] sm:$0xff]   ;;  %v2293_v20 = vld [vmem:[#allocation2] sm:$0xff]   ;;  %s2554_s16 = smov 16  }
  0x80   :  { %v148_v11 = vmul.f32 2.0, %v1727_v7  ;;  %v149_v12 = vmul.f32 2.0, %v1728_v8  ;;  %1828 = vmatprep.subr.bf16.mxu1 %v2298_v17  ;;  %v2301_v21 = vld [vmem:[%s3103_s2 + $0x80] sm:$0xff]   ;;  %v2302_v22 = vld [vmem:[%s3103_s2 + $0x10] sm:$0xff]   ;;  %v2303_v23 = vld [vmem:[%s3103_s2 + $0x58] sm:$0xff]   ;;  %s2555_s20 = smov 32  }
  0x81   :  { %v1733_v13 = vpack.c.bf16 %v147_v10, %v146_v9  ;;  %v2304_v24 = vld [vmem:[%s3103_s2 + $0x88] sm:$0xff]   ;;  %v2305_v25 = vld [vmem:[%s3103_s2 + $0x18] sm:$0xff]   ;;  %v2306_v27 = vld [vmem:[%s3103_s2 + $0x60] sm:$0xff]   ;;  %s2556_s4 = smov 80   ;;  %s2557_s21 = smov 96   ;;  %vm681_vm5 = vcmask 392192  }
  0x82   :  { %v1736_v16 = vpack.c.bf16 %v149_v12, %v148_v11  ;;  %v2294_v26 = vld [vmem:[#allocation2 + $0x8] sm:$0xff]   ;;  %v2307_v28 = vld [vmem:[%s3103_s2 + $0x90] sm:$0xff]   ;;  %v2308_v29 = vld [vmem:[%s3103_s2 + $0x20] sm:$0xff]   ;;  %s2558_s0 = smov 112   ;;  %vm684_vm6 = vcmask 654336   ;;  %vm686_vm7 = vcmask 785408  }
  0x83   :  { %1982 = vmatpush3.bf16.msk.msra.mxu0 %vm1732_vm2, %v1733_v13  ;;  %1829 = vmatpush3.bf16.msra.mxu1 %v2299_v18  ;;  %v2295_v30 = vld [vmem:[#allocation2 + $0x10] sm:$0xff]   ;;  %v2309_v31 = vld [vmem:[%s3103_s2 + $0x68] sm:$0xff]   ;;  %v2310_v32 = vld [vmem:[%s3103_s2 + $0x98] sm:$0xff]   ;;  %vm688_vm8 = vcmask 916480   ;;  %vm1242_vm9 = vcmask 64512   ;;  %vm1249_vm10 = vcmask 1043456  }
  0x84   :  { %1983 = vmatprep.subr.bf16.mxu0 %v2551_v0  ;;  %1830 = vmatprep.subr.bf16.mxu1 %v2300_v19  ;;  %v2311_v33 = vld [vmem:[%s3103_s2 + $0x28] sm:$0xff]   ;;  %v2312_v34 = vld [vmem:[%s3103_s2 + $0x70] sm:$0xff]   ;;  %v2313_v35 = vld [vmem:[%s3103_s2 + $0xa0] sm:$0xff]  }
  0x85   :  { %v2314_v36 = vld [vmem:[%s3103_s2 + $0x30] sm:$0xff]   ;;  %v2315_v37 = vld [vmem:[%s3103_s2 + $0x78] sm:$0xff]   ;;  %v2316_v38 = vld [vmem:[%s3103_s2 + $0xa8] sm:$0xff]  }
  0x86   :  { %v2317_v39 = vld [vmem:[%s3103_s2 + $0x38] sm:$0xff]   ;;  %v2318_v40 = vld [vmem:[%s3103_s2 + $0xb0] sm:$0xff]   ;;  %v525_v43 = vld [vmem:[#allocation4 + $0x8] sm:$0xff] }
  0x87   :  { %1984 = vmatpush3.bf16.msk.msra.mxu0 %vm1732_vm2, %v1736_v16  ;;  %1831 = vmatpush3.bf16.msra.mxu1 %v2302_v22  ;;  %v2319_v41 = vld [vmem:[%s3103_s2 + $0xb8] sm:$0xff]   ;;  %v526_v52 = vld [vmem:[#allocation4 + $0x10] sm:$0xff]  ;;  %v527_v53 = vld [vmem:[#allocation4 + $0x18] sm:$0xff]  ;;  %s2553_s2 = smov 48  }
  0x88   :  { %1997 = vmatprep.subr.bf16.mxu0 %v2551_v0  ;;  %1832 = vmatprep.subr.bf16.mxu1 %v2303_v23  ;;  %v524_v42 = vld [vmem:[#allocation4] sm:$0xff]  ;;  %v2181_v57 = vpack.c.bf16 %v527_v53, %v526_v52  ;;  %v529_v59 = vld [vmem:[#allocation4 + $0x28] sm:$0xff]  ;;  %v530_v63 = vld [vmem:[#allocation4 + $0x30] sm:$0xff] }
  0x89   :  { %v2177_v44 = vpack.c.bf16 %v525_v43, %v524_v42  ;;  %v528_v58 = vld [vmem:[#allocation4 + $0x20] sm:$0xff]  ;;  %v531_v1 = vld [vmem:[#allocation4 + $0x38] sm:$0xff]  ;;  %v533_v7 = vld [vmem:[#allocation4 + $0x48] sm:$0xff] }
  0x8a   :  { %1986 = vmatmul.mubr.msk.bf16.vlgmr.msra.gmra.mrb[0].mxu0 %vm178_vm3, %v2293_v20  ;;  %v2185_v61 = vpack.c.bf16 %v529_v59, %v528_v58  ;;  %v2189_v5 = vpack.c.bf16 %v531_v1, %v530_v63  ;;  %v532_v6 = vld [vmem:[#allocation4 + $0x40] sm:$0xff]  ;;  %v534_v9 = vld [vmem:[#allocation4 + $0x50] sm:$0xff]  ;;  %v535_v10 = vld [vmem:[#allocation4 + $0x58] sm:$0xff] }
  0x8b   :  { %1989 = vmatprep.mubr.msk.bf16.mxu0 %vm2552_vm0, %v2551_v0  ;;  %1998 = vmatpush3.bf16.msra.mxu0 %v2301_v21  ;;  %v2193_v8 = vpack.c.bf16 %v533_v7, %v532_v6  ;;  %v2197_v11 = vpack.c.bf16 %v535_v10, %v534_v9  ;;  %v536_v12 = vld [vmem:[#allocation4 + $0x60] sm:$0xff]  ;;  %v537_v13 = vld [vmem:[#allocation4 + $0x68] sm:$0xff]  ;;  %v538_v15 = vld [vmem:[#allocation4 + $0x70] sm:$0xff] }
  0x8c   :  { %1999 = vmatprep.subr.bf16.mxu0 %v2551_v0  ;;  %1833 = vmatpush3.bf16.msra.mxu1 %v2305_v25  ;;  %v2201_v14 = vpack.c.bf16 %v537_v13, %v536_v12  ;;  %v539_v16 = vld [vmem:[#allocation4 + $0x78] sm:$0xff]  ;;  %v654_v63 = vld [vmem:[#allocation6 + $0x1] sm:$0x1]  ;;  %v2337_v9 = vld [vmem:[%s3107_s6 + $0xa8] sm:$0xff]  }
  0x8d   :  { %1834 = vmatprep.subr.bf16.mxu1 %v2306_v27  ;;  %v2205_v17 = vpack.c.bf16 %v539_v16, %v538_v15  ;;  %v2328_v6 = vld [vmem:[%s3107_s6 + $0x90] sm:$0xff]   ;;  %v2331_v7 = vld [vmem:[%s3107_s6 + $0x98] sm:$0xff]  }
  0x8e   :  { %v2340_v10 = vld [vmem:[%s3107_s6 + $0xb0] sm:$0xff]  }
  0x8f   :  { %2000 = vmatpush3.bf16.msra.mxu0 %v2304_v24 }
  0x90   :  { %2001 = vmatprep.subr.bf16.mxu0 %v2551_v0  ;;  %1835 = vmatpush3.bf16.msra.mxu1 %v2308_v29 }
  0x91   :  { %1836 = vmatprep.subr.bf16.mxu1 %v2309_v31 }
  0x92   :  { %1990 = vmatmul.mubr.msk.bf16.gmra.mrb[4].mxu0 %vm178_vm3, %v2294_v26 }
  0x93   :  { %1993 = vmatprep.mubr.msk.bf16.mxu0 %vm2552_vm0, %v2551_v0  ;;  %2002 = vmatpush3.bf16.msra.mxu0 %v2307_v28 }
  0x94   :  { %2003 = vmatprep.subr.bf16.mxu0 %v2551_v0  ;;  %1837 = vmatpush3.bf16.msra.mxu1 %v2311_v33 }
  0x95   :  { %1838 = vmatprep.subr.bf16.mxu1 %v2312_v34 }
  0x97   :  { %2004 = vmatpush3.bf16.msra.mxu0 %v2310_v32 }
  0x98   :  { %2005 = vmatprep.subr.bf16.mxu0 %v2551_v0  ;;  %1839 = vmatpush3.bf16.msra.mxu1 %v2314_v36 }
  0x99   :  { %1840 = vmatprep.subr.bf16.mxu1 %v2315_v37 }
  0x9a   :  { %1994 = vmatmul.mubr.msk.bf16.gmra.mrb[8].mxu0 %vm178_vm3, %v2295_v30 }
  0x9b   :  { %2013 = vmatprep.mubr.msk.bf16.mxu0 %vm2552_vm0, %v2551_v0  ;;  %2006 = vmatpush3.bf16.msra.mxu0 %v2313_v35 }
  0x9c   :  { %2007 = vmatprep.subr.bf16.mxu0 %v2551_v0  ;;  %1841 = vmatpush3.bf16.msra.mxu1 %v2317_v39 }
  0x9d   :  { %2178 = vmatprep.subr.bf16.mxu1 %v2177_v44 }
  0x9f   :  { %2008 = vmatpush3.bf16.msra.mxu0 %v2316_v38 }
  0xa0   :  { %2009 = vmatprep.subr.bf16.mxu0 %v2551_v0 }
  0xa3   :  { %2010 = vmatpush3.bf16.msra.mxu0 %v2318_v40 }
  0xa4   :  { %2011 = vmatprep.subr.bf16.mxu0 %v2551_v0 }
  0xa7   :  { %2012 = vmatpush3.bf16.msra.mxu0 %v2319_v41 }
 0x15d   :  { %v222_v45 = vpop.f32.mrb[0].mxu0 }
 0x15e   :  { %v1987_v46 = vpop.f32.mrb[1].mxu0 }
 0x15f   :  { %v225_v47 = vpop.f32.mrb[2].mxu0 }
 0x160   :  { %v245_v48 = vpack.c.bf16 %v225_v47, %v222_v45  ;;  %v1988_v49 = vpop.f32.mrb[3].mxu0 }
 0x165   :  { %v230_v50 = vpop.f32.mrb[4].mxu0 }
 0x166   :  { %v1991_v51 = vpop.f32.mrb[5].mxu0 }
 0x167   :  { %v233_v54 = vpop.f32.mrb[6].mxu0 }
 0x168   :  { %v1992_v55 = vpop.f32.mrb[7].mxu0  ;;  %v246_v56 = vpack.c.bf16 %v233_v54, %v230_v50 }
 0x16a   :  { %472 = vmatprep.mubr.bf16.mxu1 %v246_v56 }
 0x16b   :  { %473 = vmatmul.mubr.bf16.vlgmr.msra.gmra.mrb[0].mxu1 %v245_v48 }
 0x16c   :  { %2180 = vmatpush3.bf16.msra.mxu1 %v2177_v44 }
 0x16d   :  { %v238_v60 = vpop.f32.mrb[8].mxu0  ;;  %2182 = vmatprep.subr.bf16.mxu1 %v2181_v57 }
 0x16e   :  { %v1995_v62 = vpop.f32.mrb[9].mxu0 }
 0x16f   :  { %v241_v2 = vpop.f32.mrb[10].mxu0 }
 0x170   :  { %v247_v3 = vpack.c.bf16 %v241_v2, %v238_v60  ;;  %v1996_v4 = vpop.f32.mrb[11].mxu0  ;;  %2184 = vmatpush3.bf16.msra.mxu1 %v2181_v57  ;;  %v652_v60 = vld [vmem:[#allocation6] sm:$0x1] }
 0x171   :  { %2186 = vmatprep.subr.bf16.mxu1 %v2185_v61  ;;  %v2322_v4 = vld [vmem:[%s3107_s6 + $0x80] sm:$0xff]  }
 0x172   :  { %2014 = vmatmul.mubr.bf16.vlgmr.msra.gmra.mrb[12].mxu0 %v247_v3  ;;  %v2320_v3 = vld [vmem:[#allocation7] sm:$0xff]  }
 0x173   :  { %2057 = vmatprep.mubr.msk.bf16.mxu0 %vm625_vm4, %v2320_v3  ;;  %v2343_v3 = vld [vmem:[%s3107_s6 + $0xb8] sm:$0xff]  }
 0x174   :  { %2188 = vmatpush3.bf16.msra.mxu1 %v2185_v61 }
 0x175   :  { %2190 = vmatprep.subr.bf16.mxu1 %v2189_v5 }
 0x178   :  { %2192 = vmatpush3.bf16.msra.mxu1 %v2189_v5  ;;  %v2325_v5 = vld [vmem:[%s3107_s6 + $0x88] sm:$0xff]  }
 0x179   :  { %2194 = vmatprep.subr.bf16.mxu1 %v2193_v8 }
 0x17c   :  { %2196 = vmatpush3.bf16.msra.mxu1 %v2193_v8  ;;  %v2334_v8 = vld [vmem:[%s3107_s6 + $0xa0] sm:$0xff]  }
 0x17d   :  { %2198 = vmatprep.subr.bf16.mxu1 %v2197_v11 }
 0x180   :  { %2200 = vmatpush3.bf16.msra.mxu1 %v2197_v11 }
 0x181   :  { %2202 = vmatprep.subr.bf16.mxu1 %v2201_v14 }
 0x184   :  { %2204 = vmatpush3.bf16.msra.mxu1 %v2201_v14 }
 0x185   :  { %2206 = vmatprep.subr.bf16.mxu1 %v2205_v17 }
 0x188   :  { %2208 = vmatpush3.bf16.msra.mxu1 %v2205_v17  ;;  %v719_v17 = vlaneseq }
 0x189   :  { %2061 = vmatprep.subr.bf16.mxu1 %v2551_v0 }
 0x23e   :  { %v1842_v18 = vpop.f32.mrb[0].mxu1 }
 0x23f   :  { %v1843_v19 = vpop.f32.mrb[1].mxu1 }
 0x240   :  { %v1844_v20 = vadd.f32 %v1843_v19, %v1842_v18  ;;  %v1845_v21 = vpop.f32.mrb[2].mxu1 }
 0x241   :  { %v1846_v22 = vpop.f32.mrb[3].mxu1 }
 0x242   :  { %v1847_v23 = vadd.f32 %v1846_v22, %v1845_v21  ;;  %v720_v22 = vshrl.u32 %v719_v17, 7 }
 0x245   :  { %v515_v24 = vpop.f32.mrb[12].mxu0 }
 0x246   :  { %v2839_v25 = vadd.f32 %v1844_v20, %v515_v24  ;;  %v2015_v26 = vpop.f32.mrb[13].mxu0 }
 0x247   :  { %v518_v27 = vpop.f32.mrb[14].mxu0 }
 0x248   :  { %v2841_v28 = vadd.f32 %v1847_v23, %v518_v27  ;;  %v2016_v29 = vpop.f32.mrb[15].mxu0  ;;  %2049 = vmatprep.mubr.f32.mxu1 %v2839_v25  ;;  %v522_v30 = vmul.f32 %v2839_v25, %v2839_v25 }
 0x24a   :  { %2050 = vmatmul.mubr.f32.vlgmr.msra.gmra.mrb[4].mxu1 %v2841_v28  ;;  %v523_v31 = vmul.f32 %v2841_v28, %v2841_v28 }
 0x24b   :  { %2052 = vmatprep.mubr.f32.mxu1 %v522_v30  ;;  %2062 = vmatpush3.bf16.msra.mxu1 %v2322_v4  ;;  %v2904_v30 = vsub.s32 0, %v720_v22  ;;  %v2344_v4 = vld [vmem:[%s3107_s6 + $0x78] sm:$0xff]  }
 0x24c   :  { %2063 = vmatprep.subr.bf16.mxu1 %v2551_v0  ;;  %v1081_v22 = vld [vmem:[#allocation9 + $0x30] sm:$0xff] }
 0x24e   :  { %2053 = vmatmul.mubr.f32.gmra.mrb[6].mxu1 %v523_v31 }
 0x24f   :  { %2077 = vmatprep.mubr.msk.bf16.mxu1 %vm2552_vm0, %v2551_v0  ;;  %2064 = vmatpush3.bf16.msra.mxu1 %v2325_v5  ;;  %v2345_v5 = vld [vmem:[%s3107_s6 + $0x38] sm:$0xff]  }
 0x250   :  { %2065 = vmatprep.subr.bf16.mxu1 %v2551_v0 }
 0x253   :  { %2066 = vmatpush3.bf16.msra.mxu1 %v2328_v6  ;;  %v1075_v6 = vld [vmem:[#allocation9] sm:$0xff] }
 0x254   :  { %2067 = vmatprep.subr.bf16.mxu1 %v2551_v0 }
 0x257   :  { %2068 = vmatpush3.bf16.msra.mxu1 %v2331_v7  ;;  %v1076_v7 = vld [vmem:[#allocation9 + $0x8] sm:$0xff] }
 0x258   :  { %2069 = vmatprep.subr.bf16.mxu1 %v2551_v0 }
 0x25b   :  { %2070 = vmatpush3.bf16.msra.mxu1 %v2334_v8  ;;  %v2209_v8 = vpack.c.bf16 %v1076_v7, %v1075_v6 }
 0x25c   :  { %2071 = vmatprep.subr.bf16.mxu1 %v2551_v0 }
 0x25f   :  { %2072 = vmatpush3.bf16.msra.mxu1 %v2337_v9 }
 0x260   :  { %2073 = vmatprep.subr.bf16.mxu1 %v2551_v0 }
 0x263   :  { %2074 = vmatpush3.bf16.msra.mxu1 %v2340_v10 }
 0x264   :  { %2075 = vmatprep.subr.bf16.mxu1 %v2551_v0 }
 0x267   :  { %2076 = vmatpush3.bf16.msra.mxu1 %v2343_v3 }
 0x31d   :  { %v2051_v32 = vpop.f32.mrb[4].mxu1 }
 0x31e   :  { %v627_v33 = vsel %vm625_vm4, %v2051_v32, 0.0  ;;  %v606_v34 = vpop.f32.mrb[5].mxu1 }
 0x31f   :  { %v626_v35 = vsel %vm625_vm4, %v606_v34, 0.0 }
 0x320   :  { %v628_v36 = vadd.f32 %v627_v33, %v626_v35 }
 0x321   :  { %v2054_v37 = vpop.f32.mrb[6].mxu1 }
 0x322   :  { %v629_v38 = vrot.slane %v628_v36, 4  ;;  %v638_v39 = vsel %vm625_vm4, %v2054_v37, 0.0  ;;  %v616_v40 = vpop.f32.mrb[7].mxu1 }
 0x323   :  { %v637_v41 = vsel %vm625_vm4, %v616_v40, 0.0 }
 0x324   :  { %v630_v42 = vadd.f32 %v629_v38, %v628_v36  ;;  %v639_v43 = vadd.f32 %v638_v39, %v637_v41 }
 0x326   :  { %v631_v44 = vrot.slane %v630_v42, 2  ;;  %v640_v45 = vrot.slane %v639_v43, 4 }
 0x328   :  { %v632_v46 = vadd.f32 %v631_v44, %v630_v42  ;;  %v641_v47 = vadd.f32 %v640_v45, %v639_v43 }
 0x32a   :  { %v633_v48 = vrot.slane %v632_v46, 1  ;;  %v642_v49 = vrot.slane %v641_v47, 2 }
 0x32c   :  { %v634_v50 = vadd.f32 %v633_v48, %v632_v46  ;;  %v643_v51 = vadd.f32 %v642_v49, %v641_v47 }
 0x32e   :  { %v636_v52 = vmul.f32 0.0078125, %v634_v50  ;;  %v644_v53 = vrot.slane %v643_v51, 1 }
 0x330   :  { %v645_v54 = vadd.f32 %v644_v53, %v643_v51  ;;  %v647_v55 = vmul.f32 %v636_v52, %v636_v52  ;;  %v2323_v53 = vld [vmem:[%s3107_s6 + $0x40] sm:$0xff]  }
 0x332   :  { %v646_v56 = vmul.f32 0.0078125, %v645_v54  ;;  %v2321_v54 = vld [vmem:[#allocation7 + $0x8] ss:$0 sps:$4 sm:$0xff]  }
 0x334   :  { %v648_v57 = vsub.f32 %v646_v56, %v647_v55  ;;  %v2327_v55 = vld [vmem:[%s3107_s6 + $0x8] sm:$0xff]   ;;  %v2329_v56 = vld [vmem:[%s3107_s6 + $0x50] sm:$0xff]  }
 0x336   :  { %v649_v58 = vmax.f32 %v648_v57, 0.0  ;;  %v2330_v57 = vld [vmem:[%s3107_s6 + $0x10] sm:$0xff]  }
 0x338   :  { %v650_v59 = vadd.f32 1e-05, %v649_v58  ;;  %v2332_v58 = vld [vmem:[%s3107_s6 + $0x58] sm:$0xff]  }
 0x33a   :  { %2372 = vrsqrt.f32 %v650_v59  ;;  %v2333_v59 = vld [vmem:[%s3107_s6 + $0x18] sm:$0xff]  }
 0x344   :  { %v2373_v61 = vpop.eup %2372 }
 0x345   :  { %v653_v62 = vmul.f32 %v2373_v61, %v652_v60  ;;  %v2335_v60 = vld [vmem:[%s3107_s6 + $0x60] sm:$0xff]  }
 0x346   :  { %v2336_v61 = vld [vmem:[%s3107_s6 + $0x20] sm:$0xff]  }
 0x347   :  { %664 = vrot.lane.b32.xlu1 %v653_v62, %s2553_s2  ;;  %658 = vrot.lane.b32.xlu0 %v653_v62, %s2554_s16  ;;  %v655_v1 = vmul.f32 %v653_v62, %v636_v52 }
 0x349   :  { %v2855_v2 = vsub.f32 %v654_v63, %v655_v1  ;;  %v2339_v63 = vld [vmem:[%s3107_s6 + $0x28] sm:$0xff]   ;;  %v2341_v1 = vld [vmem:[%s3107_s6 + $0x70] sm:$0xff]  }
 0x34b   :  { %661 = vrot.lane.b32.xlu0 %v653_v62, %s2555_s20  ;;  %691 = vrot.lane.b32.xlu1 %v2855_v2, %s2554_s16 }
 0x34f   :  { %667 = vrot.lane.b32.xlu0 %v653_v62, %s2545_s26  ;;  %694 = vrot.lane.b32.xlu1 %v2855_v2, %s2555_s20 }
 0x353   :  { %670 = vrot.lane.b32.xlu0 %v653_v62, %s2556_s4  ;;  %697 = vrot.lane.b32.xlu1 %v2855_v2, %s2553_s2 }
 0x357   :  { %673 = vrot.lane.b32.xlu0 %v653_v62, %s2557_s21  ;;  %700 = vrot.lane.b32.xlu1 %v2855_v2, %s2545_s26 }
 0x35b   :  { %676 = vrot.lane.b32.xlu0 %v653_v62, %s2558_s0  ;;  %703 = vrot.lane.b32.xlu1 %v2855_v2, %s2556_s4 }
 0x35f   :  { %706 = vrot.lane.b32.xlu0 %v2855_v2, %s2557_s21  ;;  %709 = vrot.lane.b32.xlu1 %v2855_v2, %s2558_s0 }
 0x3b9   :  { %v665_v11 = vpop.permute.xlu1 %664  ;;  %v659_v12 = vpop.permute.xlu0 %658 }
 0x3ba   :  { %v679_v20 = vsel %vm625_vm4, %v653_v62, %v659_v12  ;;  %v2338_v62 = vld [vmem:[%s3107_s6 + $0x68] sm:$0xff]  }
 0x3bd   :  { %v662_v13 = vpop.permute.xlu0 %661  ;;  %v692_v14 = vpop.permute.xlu1 %691 }
 0x3be   :  { %v680_v21 = vsel %vm178_vm3, %v679_v20, %v662_v13  ;;  %v712_v31 = vsel %vm625_vm4, %v2855_v2, %v692_v14  ;;  %v2342_v2 = vld [vmem:[%s3107_s6 + $0x30] sm:$0xff]   ;;  %v1078_v14 = vld [vmem:[#allocation9 + $0x18] sm:$0xff] }
 0x3bf   :  { %v682_v26 = vsel %vm681_vm5, %v680_v21, %v665_v11  ;;  %v1077_v13 = vld [vmem:[#allocation9 + $0x10] sm:$0xff]  ;;  %v1080_v20 = vld [vmem:[#allocation9 + $0x28] sm:$0xff] }
 0x3c1   :  { %v668_v15 = vpop.permute.xlu0 %667  ;;  %v695_v16 = vpop.permute.xlu1 %694 }
 0x3c2   :  { %v683_v27 = vsel %vm150_vm1, %v682_v26, %v668_v15  ;;  %v713_v35 = vsel %vm178_vm3, %v712_v31, %v695_v16  ;;  %v1083_v26 = vld [vmem:[#allocation9 + $0x40] sm:$0xff]  ;;  %v1085_v31 = vld [vmem:[#allocation9 + $0x50] sm:$0xff] }
 0x3c5   :  { %v671_v18 = vpop.permute.xlu0 %670  ;;  %v698_v19 = vpop.permute.xlu1 %697 }
 0x3c6   :  { %v685_v29 = vsel %vm684_vm6, %v683_v27, %v671_v18  ;;  %v714_v37 = vsel %vm681_vm5, %v713_v35, %v698_v19  ;;  %v2213_v18 = vpack.c.bf16 %v1078_v14, %v1077_v13  ;;  %v1079_v19 = vld [vmem:[#allocation9 + $0x20] sm:$0xff]  ;;  %v1084_v27 = vld [vmem:[#allocation9 + $0x48] sm:$0xff] }
 0x3c7   :  { %v2217_v21 = vpack.c.bf16 %v1080_v20, %v1079_v19  ;;  %v1088_v35 = vld [vmem:[#allocation9 + $0x68] sm:$0xff]  ;;  %v2346_v14 = vld [vmem:[#allocation10] sm:$0xff]  }
 0x3c8   :  { %v2355_v19 = vld [vmem:[%s3111_s10 + $0x50] sm:$0xff]  }
 0x3c9   :  { %v674_v23 = vpop.permute.xlu0 %673  ;;  %v701_v24 = vpop.permute.xlu1 %700  ;;  %v2356_v20 = vld [vmem:[%s3111_s10 + $0x10] sm:$0xff]  }
 0x3ca   :  { %v687_v32 = vsel %vm686_vm7, %v685_v29, %v674_v23  ;;  %v715_v38 = vsel %vm150_vm1, %v714_v37, %v701_v24  ;;  %v1082_v23 = vld [vmem:[#allocation9 + $0x38] sm:$0xff]  ;;  %v2225_v29 = vpack.c.bf16 %v1084_v27, %v1083_v26  ;;  %v1089_v37 = vld [vmem:[#allocation9 + $0x70] sm:$0xff]  ;;  %v2364_v26 = vld [vmem:[%s3111_s10 + $0x68] sm:$0xff]  }
 0x3cb   :  { %v2221_v24 = vpack.c.bf16 %v1082_v23, %v1081_v22  ;;  %v2359_v22 = vld [vmem:[%s3111_s10 + $0x18] sm:$0xff]   ;;  %v2361_v23 = vld [vmem:[%s3111_s10 + $0x60] sm:$0xff]   ;;  %v2365_v27 = vld [vmem:[%s3111_s10 + $0x28] sm:$0xff]  }
 0x3cd   :  { %v677_v33 = vpop.permute.xlu0 %676  ;;  %v704_v34 = vpop.permute.xlu1 %703 }
 0x3ce   :  { %v689_v36 = vsel %vm688_vm8, %v687_v32, %v677_v33  ;;  %v716_v40 = vsel %vm684_vm6, %v715_v38, %v704_v34  ;;  %v1086_v32 = vld [vmem:[#allocation9 + $0x58] sm:$0xff]  ;;  %v1087_v34 = vld [vmem:[#allocation9 + $0x60] sm:$0xff] }
 0x3cf   :  { %v722_v39 = vrot.slane %v689_v36, %v2904_v30  ;;  %v2229_v33 = vpack.c.bf16 %v1086_v32, %v1085_v31  ;;  %v2233_v36 = vpack.c.bf16 %v1088_v35, %v1087_v34  ;;  %v1090_v38 = vld [vmem:[#allocation9 + $0x78] sm:$0xff] }
 0x3d1   :  { %v707_v41 = vpop.permute.xlu0 %706  ;;  %v710_v42 = vpop.permute.xlu1 %709  ;;  %v723_v45 = vmul.f32 %v722_v39, %v2839_v25  ;;  %v724_v46 = vmul.f32 %v722_v39, %v2841_v28  ;;  %v2324_v25 = vld [vmem:[%s3107_s6] sm:$0xff]   ;;  %v2326_v28 = vld [vmem:[%s3107_s6 + $0x48] sm:$0xff]   ;;  %v2237_v39 = vpack.c.bf16 %v1090_v38, %v1089_v37 }
 0x3d2   :  { %v717_v43 = vsel %vm686_vm7, %v716_v40, %v707_v41 }
 0x3d3   :  { %v718_v44 = vsel %vm688_vm8, %v717_v43, %v710_v42 }
 0x3d4   :  { %v728_v47 = vrot.slane %v718_v44, %v2904_v30 }
 0x3d6   :  { %v729_v48 = vadd.f32 %v728_v47, %v723_v45  ;;  %v730_v49 = vadd.f32 %v728_v47, %v724_v46 }
 0x3d8   :  { %v731_v50 = vmax.f32 %v729_v48, 0.0  ;;  %v732_v51 = vmax.f32 %v730_v49, 0.0 }
 0x3da   :  { %v733_v52 = vpack.c.bf16 %v732_v51, %v731_v50 }
 0x3dc   :  { %2055 = vmatprep.subr.bf16.mxu0 %v733_v52 }
 0x3dd   :  { %2056 = vmatpush3.bf16.msra.mxu0 %v733_v52 }
 0x3de   :  { %1880 = vmatprep.subr.bf16.mxu0 %v2323_v53 }
 0x3e0   :  { %2058 = vmatmul.mubr.msk.bf16.vlgmr.msra.gmra.mrb[16].mxu0 %vm625_vm4, %v2321_v54 }
 0x3e1   :  { %1881 = vmatpush3.bf16.msra.mxu0 %v2324_v25 }
 0x3e2   :  { %1882 = vmatprep.subr.bf16.mxu0 %v2326_v28 }
 0x3e5   :  { %1883 = vmatpush3.bf16.msra.mxu0 %v2327_v55 }
 0x3e6   :  { %1884 = vmatprep.subr.bf16.mxu0 %v2329_v56 }
 0x3e9   :  { %1885 = vmatpush3.bf16.msra.mxu0 %v2330_v57 }
 0x3ea   :  { %1886 = vmatprep.subr.bf16.mxu0 %v2332_v58 }
 0x3ed   :  { %1887 = vmatpush3.bf16.msra.mxu0 %v2333_v59 }
 0x3ee   :  { %1888 = vmatprep.subr.bf16.mxu0 %v2335_v60 }
 0x3f1   :  { %1889 = vmatpush3.bf16.msra.mxu0 %v2336_v61 }
 0x3f2   :  { %1890 = vmatprep.subr.bf16.mxu0 %v2338_v62 }
 0x3f5   :  { %1891 = vmatpush3.bf16.msra.mxu0 %v2339_v63 }
 0x3f6   :  { %1892 = vmatprep.subr.bf16.mxu0 %v2341_v1 }
 0x3f9   :  { %1893 = vmatpush3.bf16.msra.mxu0 %v2342_v2 }
 0x3fa   :  { %1894 = vmatprep.subr.bf16.mxu0 %v2344_v4 }
 0x3fd   :  { %1895 = vmatpush3.bf16.msra.mxu0 %v2345_v5 }
 0x3fe   :  { %2210 = vmatprep.subr.bf16.mxu0 %v2209_v8 }
 0x4b3   :  { %v2059_v9 = vpop.f32.mrb[16].mxu0 }
 0x4b4   :  { %v801_v10 = vpack.c.bf16 %v2059_v9, %v2059_v9  ;;  %v785_v11 = vpop.f32.mrb[17].mxu0 }
 0x4b5   :  { %v2060_v12 = vpop.f32.mrb[18].mxu0  ;;  %v799_v17 = vpack.c.bf16 %v785_v11, %v785_v11  ;;  %v1190_v11 = vld [vmem:[%s3109_s8 + $0x1] sm:$0x1] }
 0x4b6   :  { %v788_v15 = vpop.f32.mrb[19].mxu0  ;;  %2078 = vmatmul.mubr.bf16.vlgmr.msra.gmra.mrb[8].mxu1 %v801_v10 }
 0x4b7   :  { %v800_v16 = vpack.c.bf16 %v788_v15, %v788_v15  ;;  %v2349_v15 = vld [vmem:[%s3111_s10 + $0x40] sm:$0xff]  }
 0x4b8   :  { %1932 = vmatprep.subr.bf16.mxu1 %v2349_v15  ;;  %v1585_v15 = vld [vmem:[#allocation12 + $0x40] sm:$0xff] }
 0x4b9   :  { %1026 = vmatprep.mubr.bf16.mxu0 %v800_v16  ;;  %v2350_v16 = vld [vmem:[%s3111_s10] sm:$0xff]  }
 0x4ba   :  { %1027 = vmatmul.mubr.bf16.vlgmr.msra.gmra.mrb[20].mxu0 %v799_v17  ;;  %1933 = vmatpush3.bf16.msra.mxu1 %v2350_v16  ;;  %v2352_v17 = vld [vmem:[%s3111_s10 + $0x48] sm:$0xff]   ;;  %v1586_v16 = vld [vmem:[#allocation12 + $0x48] sm:$0xff] }
 0x4bb   :  { %2212 = vmatpush3.bf16.msra.mxu0 %v2209_v8  ;;  %v1188_v8 = vld [vmem:[%s3109_s8] sm:$0x1]  ;;  %1934 = vmatprep.subr.bf16.mxu1 %v2352_v17  ;;  %v2257_v17 = vpack.c.bf16 %v1586_v16, %v1585_v15 }
 0x4bc   :  { %2214 = vmatprep.subr.bf16.mxu0 %v2213_v18 }
 0x4bf   :  { %2216 = vmatpush3.bf16.msra.mxu0 %v2213_v18  ;;  %v2353_v18 = vld [vmem:[%s3111_s10 + $0x8] sm:$0xff]  }
 0x4c0   :  { %2218 = vmatprep.subr.bf16.mxu0 %v2217_v21  ;;  %1935 = vmatpush3.bf16.msra.mxu1 %v2353_v18  ;;  %v1587_v18 = vld [vmem:[#allocation12 + $0x50] sm:$0xff] }
 0x4c1   :  { %1936 = vmatprep.subr.bf16.mxu1 %v2355_v19  ;;  %v1588_v19 = vld [vmem:[#allocation12 + $0x58] sm:$0xff] }
 0x4c3   :  { %2220 = vmatpush3.bf16.msra.mxu0 %v2217_v21  ;;  %v2358_v21 = vld [vmem:[%s3111_s10 + $0x58] sm:$0xff]  }
 0x4c4   :  { %2222 = vmatprep.subr.bf16.mxu0 %v2221_v24  ;;  %1937 = vmatpush3.bf16.msra.mxu1 %v2356_v20  ;;  %v2261_v20 = vpack.c.bf16 %v1588_v19, %v1587_v18 }
 0x4c5   :  { %1938 = vmatprep.subr.bf16.mxu1 %v2358_v21  ;;  %v1589_v21 = vld [vmem:[#allocation12 + $0x60] sm:$0xff] }
 0x4c7   :  { %2224 = vmatpush3.bf16.msra.mxu0 %v2221_v24  ;;  %v2362_v24 = vld [vmem:[%s3111_s10 + $0x20] sm:$0xff]  }
 0x4c8   :  { %2226 = vmatprep.subr.bf16.mxu0 %v2225_v29  ;;  %1939 = vmatpush3.bf16.msra.mxu1 %v2359_v22  ;;  %v1590_v22 = vld [vmem:[#allocation12 + $0x68] sm:$0xff] }
 0x4c9   :  { %1940 = vmatprep.subr.bf16.mxu1 %v2361_v23  ;;  %v2265_v23 = vpack.c.bf16 %v1590_v22, %v1589_v21 }
 0x4cb   :  { %2228 = vmatpush3.bf16.msra.mxu0 %v2225_v29  ;;  %v2367_v29 = vld [vmem:[%s3111_s10 + $0x70] sm:$0xff]  }
 0x4cc   :  { %2230 = vmatprep.subr.bf16.mxu0 %v2229_v33  ;;  %1941 = vmatpush3.bf16.msra.mxu1 %v2362_v24  ;;  %v1591_v24 = vld [vmem:[#allocation12 + $0x70] sm:$0xff] }
 0x4cd   :  { %1942 = vmatprep.subr.bf16.mxu1 %v2364_v26  ;;  %v1592_v26 = vld [vmem:[#allocation12 + $0x78] sm:$0xff] }
 0x4cf   :  { %2232 = vmatpush3.bf16.msra.mxu0 %v2229_v33 }
 0x4d0   :  { %2234 = vmatprep.subr.bf16.mxu0 %v2233_v36  ;;  %1943 = vmatpush3.bf16.msra.mxu1 %v2365_v27  ;;  %v2269_v27 = vpack.c.bf16 %v1592_v26, %v1591_v24 }
 0x4d1   :  { %1944 = vmatprep.subr.bf16.mxu1 %v2367_v29 }
 0x4d3   :  { %2236 = vmatpush3.bf16.msra.mxu0 %v2233_v36 }
 0x4d4   :  { %2238 = vmatprep.subr.bf16.mxu0 %v2237_v39 }
 0x4d7   :  { %2240 = vmatpush3.bf16.msra.mxu0 %v2237_v39 }
 0x589   :  { %v1068_v40 = vpop.f32.mrb[8].mxu1 }
 0x58a   :  { %v2079_v41 = vpop.f32.mrb[9].mxu1 }
 0x58b   :  { %v1071_v42 = vpop.f32.mrb[10].mxu1 }
 0x58c   :  { %v2080_v43 = vpop.f32.mrb[11].mxu1 }
 0x58d   :  { %v1896_v44 = vpop.f32.mrb[20].mxu0 }
 0x58e   :  { %v1897_v45 = vpop.f32.mrb[21].mxu0 }
 0x58f   :  { %v1898_v46 = vadd.f32 %v1897_v45, %v1896_v44  ;;  %v1899_v47 = vpop.f32.mrb[22].mxu0 }
 0x590   :  { %v1900_v48 = vpop.f32.mrb[23].mxu0 }
 0x591   :  { %v2972_v49 = vadd.f32 %v1898_v46, %v1068_v40 }
 0x593   :  { %v1074_v50 = vmul.f32 %v2972_v49, %v2972_v49  ;;  %2113 = vmatprep.mubr.f32.mxu0 %v2972_v49 }
 0x595   :  { %2114 = vmatmul.mubr.f32.vlgmr.msra.gmra.mrb[24].mxu0 %v1074_v50 }
 0x596   :  { %2118 = vmatprep.mubr.msk.bf16.mxu0 %vm1242_vm9, %v2346_v14 }
 0x668   :  { %v2115_v51 = vpop.f32.mrb[24].mxu0 }
 0x669   :  { %v1175_v52 = vsel %vm178_vm3, %v2115_v51, 0.0  ;;  %v1157_v53 = vpop.f32.mrb[25].mxu0  ;;  %v2347_v51 = vld [vmem:[#allocation10 + $0x8] ss:$0 sps:$4 sm:$0xff]  }
 0x66a   :  { %v1176_v54 = vrot.slane %v1175_v52, 4  ;;  %v1166_v25 = vsel %vm178_vm3, %v1157_v53, 0.0  ;;  %v2354_v53 = vld [vmem:[%s3111_s10 + $0x90] sm:$0xff]  }
 0x66b   :  { %v1167_v28 = vrot.slane %v1166_v25, 4 }
 0x66c   :  { %v1177_v55 = vadd.f32 %v1176_v54, %v1175_v52  ;;  %v2348_v52 = vld [vmem:[%s3111_s10 + $0x80] sm:$0xff]   ;;  %v2357_v54 = vld [vmem:[%s3111_s10 + $0x98] sm:$0xff]  }
 0x66d   :  { %v1168_v56 = vadd.f32 %v1167_v28, %v1166_v25  ;;  %v2360_v25 = vld [vmem:[%s3111_s10 + $0xa0] sm:$0xff]   ;;  %v2363_v28 = vld [vmem:[%s3111_s10 + $0xa8] sm:$0xff]  }
 0x66e   :  { %v1178_v57 = vrot.slane %v1177_v55, 2 }
 0x66f   :  { %v1169_v58 = vrot.slane %v1168_v56, 2 }
 0x670   :  { %v1179_v59 = vadd.f32 %v1178_v57, %v1177_v55  ;;  %v2366_v55 = vld [vmem:[%s3111_s10 + $0xb0] sm:$0xff]   ;;  %v2369_v57 = vld [vmem:[%s3111_s10 + $0xb8] sm:$0xff]  }
 0x671   :  { %v1170_v60 = vadd.f32 %v1169_v58, %v1168_v56  ;;  %v2368_v56 = vld [vmem:[%s3111_s10 + $0x30] sm:$0xff]   ;;  %v2370_v58 = vld [vmem:[%s3111_s10 + $0x78] sm:$0xff]  }
 0x672   :  { %v1180_v61 = vrot.slane %v1179_v59, 1  ;;  %1945 = vmatpush3.bf16.msra.mxu1 %v2368_v56 }
 0x673   :  { %v1171_v62 = vrot.slane %v1170_v60, 1  ;;  %1946 = vmatprep.subr.bf16.mxu1 %v2370_v58 }
 0x674   :  { %v1181_v63 = vadd.f32 %v1180_v61, %v1179_v59  ;;  %v2371_v59 = vld [vmem:[%s3111_s10 + $0x38] sm:$0xff]  }
 0x675   :  { %v1172_v1 = vadd.f32 %v1171_v62, %v1170_v60  ;;  %v1578_v60 = vld [vmem:[#allocation12 + $0x8] sm:$0xff] }
 0x676   :  { %v1182_v3 = vmul.f32 0.03125, %v1181_v63  ;;  %1947 = vmatpush3.bf16.msra.mxu1 %v2371_v59 }
 0x677   :  { %v1174_v2 = vmul.f32 0.03125, %v1172_v1 }
 0x679   :  { %v1183_v4 = vmul.f32 %v1174_v2, %v1174_v2 }
 0x67b   :  { %v1184_v5 = vsub.f32 %v1182_v3, %v1183_v4  ;;  %v1579_v3 = vld [vmem:[#allocation12 + $0x10] sm:$0xff]  ;;  %v1580_v4 = vld [vmem:[#allocation12 + $0x18] sm:$0xff] }
 0x67d   :  { %v1185_v6 = vmax.f32 %v1184_v5, 0.0 }
 0x67f   :  { %v1186_v7 = vadd.f32 1e-05, %v1185_v6 }
 0x681   :  { %2374 = vrsqrt.f32 %v1186_v7 }
 0x68b   :  { %v2375_v9 = vpop.eup %2374 }
 0x68c   :  { %v1189_v10 = vmul.f32 %v2375_v9, %v1188_v8  ;;  %v2245_v8 = vpack.c.bf16 %v1580_v4, %v1579_v3  ;;  %v1581_v9 = vld [vmem:[#allocation12 + $0x20] sm:$0xff] }
 0x68e   :  { %v1191_v12 = vmul.f32 %v1189_v10, %v1174_v2  ;;  %1197 = vrot.lane.b32.xlu1 %v1189_v10, %s2545_s26  ;;  %1194 = vrot.lane.b32.xlu0 %v1189_v10, %s2555_s20 }
 0x690   :  { %v1192_v13 = vsub.f32 %v1190_v11, %v1191_v12  ;;  %v1583_v12 = vld [vmem:[#allocation12 + $0x30] sm:$0xff] }
 0x692   :  { %1200 = vrot.lane.b32.xlu0 %v1189_v10, %s2557_s21  ;;  %1207 = vrot.lane.b32.xlu1 %v1192_v13, %s2555_s20 }
 0x696   :  { %1210 = vrot.lane.b32.xlu0 %v1192_v13, %s2545_s26  ;;  %1213 = vrot.lane.b32.xlu1 %v1192_v13, %s2557_s21 }
 0x700   :  { %v1198_v31 = vpop.permute.xlu1 %1197  ;;  %v1195_v32 = vpop.permute.xlu0 %1194 }
 0x701   :  { %v1203_v33 = vsel %vm178_vm3, %v1189_v10, %v1195_v32  ;;  %v1582_v10 = vld [vmem:[#allocation12 + $0x28] sm:$0xff] }
 0x702   :  { %v1204_v34 = vsel %vm150_vm1, %v1203_v33, %v1198_v31  ;;  %v2249_v11 = vpack.c.bf16 %v1582_v10, %v1581_v9 }
 0x704   :  { %v1201_v35 = vpop.permute.xlu0 %1200  ;;  %v1208_v36 = vpop.permute.xlu1 %1207 }
 0x705   :  { %v1205_v37 = vsel %vm686_vm7, %v1204_v34, %v1201_v35  ;;  %v1216_v39 = vsel %vm178_vm3, %v1192_v13, %v1208_v36  ;;  %v1584_v13 = vld [vmem:[#allocation12 + $0x38] sm:$0xff] }
 0x706   :  { %v1222_v38 = vrot.slane %v1205_v37, %v2904_v30  ;;  %v2253_v14 = vpack.c.bf16 %v1584_v13, %v1583_v12 }
 0x708   :  { %v1211_v40 = vpop.permute.xlu0 %1210  ;;  %v1214_v41 = vpop.permute.xlu1 %1213  ;;  %v1223_v44 = vmul.f32 %v1222_v38, %v2972_v49  ;;  %v2351_v49 = vld [vmem:[%s3111_s10 + $0x88] sm:$0xff]  }
 0x709   :  { %v1217_v42 = vsel %vm150_vm1, %v1216_v39, %v1211_v40 }
 0x70a   :  { %v1218_v43 = vsel %vm686_vm7, %v1217_v42, %v1214_v41 }
 0x70b   :  { %v1227_v45 = vrot.slane %v1218_v43, %v2904_v30 }
 0x70d   :  { %v1228_v46 = vadd.f32 %v1227_v45, %v1223_v44 }
 0x70f   :  { %v1229_v47 = vmax.f32 %v1228_v46, 0.0 }
 0x711   :  { %v1230_v48 = vpack.c.bf16 %v1229_v47, %v1229_v47 }
 0x713   :  { %2273 = vmatprep.subr.msk.bf16.mxu0 %vm1249_vm10, %v1230_v48  ;;  %v1251_v50 = vsel %vm1249_vm10, %v1230_v48, 0 }
 0x714   :  { %2117 = vmatpush3.bf16.msra.mxu0 %v1251_v50 }
 0x715   :  { %2122 = vmatprep.subr.bf16.mxu0 %v2551_v0 }
 0x717   :  { %2119 = vmatmul.mubr.msk.bf16.vlgmr.msra.gmra.mrb[28].mxu0 %vm1242_vm9, %v2347_v51 }
 0x718   :  { %2123 = vmatpush3.bf16.msra.mxu0 %v2348_v52  ;;  %2138 = vmatprep.mubr.msk.bf16.mxu0 %vm2552_vm0, %v2551_v0 }
 0x719   :  { %2124 = vmatprep.subr.bf16.mxu0 %v2551_v0 }
 0x71c   :  { %2125 = vmatpush3.bf16.msra.mxu0 %v2351_v49 }
 0x71d   :  { %2126 = vmatprep.subr.bf16.mxu0 %v2551_v0 }
 0x720   :  { %2127 = vmatpush3.bf16.msra.mxu0 %v2354_v53 }
 0x721   :  { %2128 = vmatprep.subr.bf16.mxu0 %v2551_v0 }
 0x724   :  { %2129 = vmatpush3.bf16.msra.mxu0 %v2357_v54 }
 0x725   :  { %2130 = vmatprep.subr.bf16.mxu0 %v2551_v0 }
 0x728   :  { %2131 = vmatpush3.bf16.msra.mxu0 %v2360_v25 }
 0x729   :  { %2132 = vmatprep.subr.bf16.mxu0 %v2551_v0 }
 0x72c   :  { %2133 = vmatpush3.bf16.msra.mxu0 %v2363_v28 }
 0x72d   :  { %2134 = vmatprep.subr.bf16.mxu0 %v2551_v0 }
 0x730   :  { %2135 = vmatpush3.bf16.msra.mxu0 %v2366_v55 }
 0x731   :  { %2136 = vmatprep.subr.bf16.mxu0 %v2551_v0  ;;  %v1577_v0 = vld [vmem:[#allocation12] sm:$0xff] }
 0x732   :  { %v2241_v61 = vpack.c.bf16 %v1578_v60, %v1577_v0  ;;  %v1690_v60 = vld [vmem:[%s3113_s12] sm:$0x1] }
 0x734   :  { %2137 = vmatpush3.bf16.msra.mxu0 %v2369_v57  ;;  %2242 = vmatprep.subr.bf16.mxu1 %v2241_v61 }
 0x7ea   :  { %v2120_v62 = vpop.f32.mrb[28].mxu0 }
 0x7eb   :  { %v1303_v63 = vpack.c.bf16 %v2120_v62, %v2120_v62  ;;  %v1287_v1 = vpop.f32.mrb[29].mxu0 }
 0x7ec   :  { %v2121_v2 = vpop.f32.mrb[30].mxu0  ;;  %v1301_v7 = vpack.c.bf16 %v1287_v1, %v1287_v1 }
 0x7ed   :  { %v1290_v5 = vpop.f32.mrb[31].mxu0  ;;  %2139 = vmatmul.mubr.bf16.vlgmr.msra.gmra.mrb[32].mxu0 %v1303_v63  ;;  %v1692_v63 = vld [vmem:[%s3113_s12 + $0x1] sm:$0x1] }
 0x7ee   :  { %v1302_v6 = vpack.c.bf16 %v1290_v5, %v1290_v5 }
 0x7f0   :  { %1528 = vmatprep.mubr.bf16.mxu1 %v1302_v6 }
 0x7f1   :  { %1529 = vmatmul.mubr.bf16.vlgmr.msra.gmra.mrb[12].mxu1 %v1301_v7 }
 0x7f2   :  { %2244 = vmatpush3.bf16.msra.mxu1 %v2241_v61 }
 0x7f3   :  { %2246 = vmatprep.subr.bf16.mxu1 %v2245_v8 }
 0x7f6   :  { %2248 = vmatpush3.bf16.msra.mxu1 %v2245_v8 }
 0x7f7   :  { %2250 = vmatprep.subr.bf16.mxu1 %v2249_v11 }
 0x7fa   :  { %2252 = vmatpush3.bf16.msra.mxu1 %v2249_v11 }
 0x7fb   :  { %2254 = vmatprep.subr.bf16.mxu1 %v2253_v14 }
 0x7fe   :  { %2256 = vmatpush3.bf16.msra.mxu1 %v2253_v14 }
 0x7ff   :  { %2258 = vmatprep.subr.bf16.mxu1 %v2257_v17 }
 0x802   :  { %2260 = vmatpush3.bf16.msra.mxu1 %v2257_v17 }
 0x803   :  { %2262 = vmatprep.subr.bf16.mxu1 %v2261_v20 }
 0x806   :  { %2264 = vmatpush3.bf16.msra.mxu1 %v2261_v20 }
 0x807   :  { %2266 = vmatprep.subr.bf16.mxu1 %v2265_v23 }
 0x80a   :  { %2268 = vmatpush3.bf16.msra.mxu1 %v2265_v23 }
 0x80b   :  { %2270 = vmatprep.subr.bf16.mxu1 %v2269_v27 }
 0x80e   :  { %2272 = vmatpush3.bf16.msra.mxu1 %v2269_v27 }
 0x8c0   :  { %v1570_v29 = vpop.f32.mrb[32].mxu0 }
 0x8c1   :  { %v2140_v31 = vpop.f32.mrb[33].mxu0 }
 0x8c2   :  { %v1573_v32 = vpop.f32.mrb[34].mxu0 }
 0x8c3   :  { %v2141_v33 = vpop.f32.mrb[35].mxu0 }
 0x8c4   :  { %v1948_v34 = vpop.f32.mrb[12].mxu1 }
 0x8c5   :  { %v1949_v35 = vpop.f32.mrb[13].mxu1 }
 0x8c6   :  { %v1950_v36 = vadd.f32 %v1949_v35, %v1948_v34  ;;  %v1951_v37 = vpop.f32.mrb[14].mxu1 }
 0x8c7   :  { %v1952_v38 = vpop.f32.mrb[15].mxu1 }
 0x8c8   :  { %v1571_v39 = vadd.f32 %v1950_v36, %v1570_v29 }
 0x8ca   :  { %v1576_v40 = vmul.f32 %v1571_v39, %v1571_v39  ;;  %2174 = vmatprep.mubr.f32.mxu1 %v1571_v39 }
 0x8cc   :  { %2175 = vmatmul.mubr.f32.vlgmr.msra.gmra.mrb[16].mxu1 %v1576_v40 }
 0x99f   :  { %v2176_v41 = vpop.f32.mrb[16].mxu1 }
 0x9a0   :  { %v1677_v42 = vsel %vm150_vm1, %v2176_v41, 0.0  ;;  %v1659_v43 = vpop.f32.mrb[17].mxu1 }
 0x9a1   :  { %v1678_v44 = vrot.slane %v1677_v42, 4  ;;  %v1668_v45 = vsel %vm150_vm1, %v1659_v43, 0.0 }
 0x9a2   :  { %v1669_v46 = vrot.slane %v1668_v45, 4 }
 0x9a3   :  { %v1679_v47 = vadd.f32 %v1678_v44, %v1677_v42 }
 0x9a4   :  { %v1670_v48 = vadd.f32 %v1669_v46, %v1668_v45 }
 0x9a5   :  { %v1680_v50 = vrot.slane %v1679_v47, 2 }
 0x9a6   :  { %v1671_v51 = vrot.slane %v1670_v48, 2 }
 0x9a7   :  { %v1681_v52 = vadd.f32 %v1680_v50, %v1679_v47 }
 0x9a8   :  { %v1672_v49 = vadd.f32 %v1671_v51, %v1670_v48 }
 0x9a9   :  { %v1682_v53 = vrot.slane %v1681_v52, 1 }
 0x9aa   :  { %v1673_v54 = vrot.slane %v1672_v49, 1 }
 0x9ab   :  { %v1683_v25 = vadd.f32 %v1682_v53, %v1681_v52 }
 0x9ac   :  { %v1674_v28 = vadd.f32 %v1673_v54, %v1672_v49 }
 0x9ad   :  { %v1684_v56 = vmul.f32 0.125, %v1683_v25 }
 0x9ae   :  { %v1676_v55 = vmul.f32 0.125, %v1674_v28 }
 0x9b0   :  { %v1685_v57 = vmul.f32 %v1676_v55, %v1676_v55 }
 0x9b2   :  { %v1686_v58 = vsub.f32 %v1684_v56, %v1685_v57 }
 0x9b4   :  { %v1687_v59 = vmax.f32 %v1686_v58, 0.0 }
 0x9b6   :  { %v1688_v0 = vadd.f32 1e-05, %v1687_v59 }
 0x9b8   :  { %2376 = vrsqrt.f32 %v1688_v0 }
 0x9c2   :  { %v2377_v61 = vpop.eup %2376 }
 0x9c3   :  { %v1691_v62 = vmul.f32 %v2377_v61, %v1690_v60 }
 0x9c5   :  { %1696 = vrot.lane.b32.xlu0 %v1691_v62, %s2545_s26  ;;  %v1693_v1 = vmul.f32 %v1691_v62, %v1676_v55 }
 0x9c7   :  { %v1694_v2 = vsub.f32 %v1692_v63, %v1693_v1 }
 0x9c9   :  { %1701 = vrot.lane.b32.xlu1 %v1694_v2, %s2545_s26 }
 0xa37   :  { %v1697_v3 = vpop.permute.xlu0 %1696 }
 0xa38   :  { %v1699_v4 = vsel %vm150_vm1, %v1691_v62, %v1697_v3 }
 0xa39   :  { %v1708_v5 = vrot.slane %v1699_v4, %v2904_v30 }
 0xa3b   :  { %v1702_v6 = vpop.permute.xlu1 %1701  ;;  %v1709_v8 = vmul.f32 %v1708_v5, %v1571_v39 }
 0xa3c   :  { %v1704_v7 = vsel %vm150_vm1, %v1694_v2, %v1702_v6 }
 0xa3d   :  { %v1713_v9 = vrot.slane %v1704_v7, %v2904_v30 }
 0xa3f   :  { %v1714_v10 = vadd.f32 %v1713_v9, %v1709_v8 }
 0xa41   :  { %v1715_v11 = vmax.f32 %v1714_v10, 0.0 }
 0xa43   :  { %1716 = vst [vmem:[%s3114_s13] sm:$0xf] %v1715_v11 }
 0xa44   :  { %1721 = vsyncpa [#allocation3], 1 }
 0xa45   :  { %1722 = vsyncpa [#allocation5], 1 }
 0xa46   :  { %1723 = vsyncpa [#allocation8], 1 }
 0xa47   :  { %1724 = vsyncpa [#allocation11], 1 }

</bundles_post_ra>
